<compile_context>
chip_gen: v5e
topology: v5e:2x2
jax: 0.10.0
libtpu: 0.0.40
codegen_flags: <defaults>
</compile_context>

<pallas_src>
import numpy as np
import jax
import jax.numpy as jnp
from jax.experimental import pallas as pl
from jax.experimental.pallas import tpu as pltpu


# ----------------------------------------------------------------------------
# helpers
# ----------------------------------------------------------------------------
def _round_up(x, m):
    return ((x + m - 1) // m) * m


def _pick_tile_m(n, k, f_pad, c_pad, tile_m, vmem_budget_bytes=24 * 1024 * 1024):
    """Largest voxel-axis tile whose double-buffered working set fits a
    conservative VMEM budget (sized for v7x's 64 MiB physical / 32 MiB scoped)."""
    tm = max(8, min(_round_up(tile_m, 8), _round_up(n, 8)))
    while tm > 8:
        use = (2 * tm * k * 2                          # patches tile, bf16, double-buffered
               + 2 * tm * c_pad * 4                    # output tile, f32, double-buffered
               + 2 * (k * f_pad + f_pad * c_pad) * 2   # weights, bf16
               + 2 * (f_pad + c_pad) * 4)              # shift / bias, f32
        if use <= vmem_budget_bytes:
            break
        tm = max(8, _round_up(tm // 2, 8))
    return tm


def _im2col_3d(x_nhwdc):
    """(B, H, W, D, C) -> (B, H*W*D, 27*C), tap-major (ky, kx, kz) then channel."""
    B, H, W, D, C = x_nhwdc.shape
    xp = jnp.pad(x_nhwdc, ((0, 0), (1, 1), (1, 1), (1, 1), (0, 0)))
    cols = []
    for ky in range(3):
        for kx in range(3):
            for kz in range(3):
                cols.append(xp[:, ky:ky + H, kx:kx + W, kz:kz + D, :])
    p = jnp.stack(cols, axis=-2)                        # (B, H, W, D, 27, C)
    return p.reshape(B, H * W * D, 27 * C)


# ----------------------------------------------------------------------------
# fused Pallas kernel: conv3x3x3 (as one wide GEMM over im2col patches)
#   -> +BN shift -> ReLU -> block-diagonal 1x1 GEMM for all heads
#   -> sigmoid+clamp on the heatmap columns only
# ----------------------------------------------------------------------------
def _make_fused_kernel(num_sigmoid_cols):
    def kernel(p_ref, w1_ref, shift_ref, w2_ref, b2_ref, o_ref):
        x = p_ref[0]                                                    # (TM, 27*Cin) bf16
        y = jnp.dot(x, w1_ref[...], preferred_element_type=jnp.float32)  # (TM, F_pad) f32
        y = jnp.maximum(y + shift_ref[...], 0.0)                        # BN shift (+conv bias) + ReLU
        y = y.astype(jnp.bfloat16)
        out = jnp.dot(y, w2_ref[...], preferred_element_type=jnp.float32)
        out = out + b2_ref[...]                                         # (TM, C_pad) f32
        # sigmoid + clamp only on the heatmap columns (they are a prefix)
        col = jax.lax.broadcasted_iota(jnp.int32, out.shape, 1)
        sig = jnp.clip(jax.nn.sigmoid(out), 1e-4, 1.0 - 1e-4)
        out = jnp.where(col < num_sigmoid_cols, sig, out)
        o_ref[0] = out.astype(o_ref.dtype)
    return kernel


def _fused_forward(fused, patches, num_sigmoid_cols, tile_m):
    B, N, K = patches.shape
    F_pad = fused["w1"].shape[1]
    C_pad = fused["w2"].shape[1]

    tm = _pick_tile_m(N, K, F_pad, C_pad, tile_m)
    n_tiles = pl.cdiv(N, tm)
    n_pad = n_tiles * tm
    if n_pad != N:
        patches = jnp.pad(patches, ((0, 0), (0, n_pad - N), (0, 0)))

    out = pl.pallas_call(
        _make_fused_kernel(num_sigmoid_cols),
        out_shape=jax.ShapeDtypeStruct((B, n_pad, C_pad), jnp.float32),
        grid=(B, n_tiles),
        in_specs=[
            pl.BlockSpec((1, tm, K), lambda b, m: (b, m, 0)),
            pl.BlockSpec((K, F_pad), lambda b, m: (0, 0)),
            pl.BlockSpec((1, F_pad), lambda b, m: (0, 0)),
            pl.BlockSpec((F_pad, C_pad), lambda b, m: (0, 0)),
            pl.BlockSpec((1, C_pad), lambda b, m: (0, 0)),
        ],
        out_specs=pl.BlockSpec((1, tm, C_pad), lambda b, m: (b, m, 0)),
        compiler_params=pltpu.CompilerParams(
            dimension_semantics=("parallel", "parallel"),
            vmem_limit_bytes=32 * 1024 * 1024,
        ),
    )(patches, fused["w1"], fused["shift"], fused["w2"], fused["b2"])
    return out[:, :N, :]


# ----------------------------------------------------------------------------
# parameter construction (synthetic, inference-mode BN folded)
# ----------------------------------------------------------------------------
def _init_trunk(key, cin, f, eps=1e-5):
    """SparseConv3d(3x3x3) + BatchNorm, folded to (w1*scale, shift)."""
    ks = jax.random.split(key, 6)
    w1 = jax.random.normal(ks[0], (3, 3, 3, cin, f), jnp.float32) / np.sqrt(27.0 * cin)
    b1 = 0.01 * jax.random.normal(ks[1], (f,), jnp.float32)
    gamma = 1.0 + 0.1 * jax.random.normal(ks[2], (f,), jnp.float32)
    beta = 0.1 * jax.random.normal(ks[3], (f,), jnp.float32)
    rmean = 0.1 * jax.random.normal(ks[4], (f,), jnp.float32)
    rvar = 1.0 + 0.1 * jnp.abs(jax.random.normal(ks[5], (f,), jnp.float32))
    scale = gamma / jnp.sqrt(rvar + eps)
    w1s = w1.reshape(27 * cin, f) * scale[None, :]      # BN scale folded into conv weight
    shift = beta - rmean * scale + b1 * scale           # conv bias folded into BN shift
    return np.asarray(w1s, np.float32), np.asarray(shift, np.float32)


def _init_pointwise(key, f, cout):
    """SubMConv3d(1x1x1) weight + bias."""
    k1, k2 = jax.random.split(key)
    w2 = jax.random.normal(k1, (f, cout), jnp.float32) / np.sqrt(float(f))
    b2 = 0.01 * jax.random.normal(k2, (cout,), jnp.float32)
    return np.asarray(w2, np.float32), np.asarray(b2, np.float32)


class M3DHeatMapHeadPallas:
    """Forward-pass-only reimplementation of M3D_HeatMap_head on dense voxels."""

    def __init__(self, in_channel, feat_channel, num_classes, num_alpha_bins=12,
                 key=jax.random.PRNGKey(0), tile_m=1024):
        self.num_classes = num_classes
        self.num_alpha_bins = num_alpha_bins
        self.tile_m = tile_m

        F = feat_channel
        K = 27 * in_channel
        nc, ab = num_classes, num_alpha_bins

        ks = jax.random.split(key, 11)
        trunks = {                      # SparseConv3x3x3 + BN (+ReLU), one per branch
            "heatmap": _init_trunk(ks[0], in_channel, F),
            "offset":  _init_trunk(ks[1], in_channel, F),
            "depth":   _init_trunk(ks[2], in_channel, F),
            "dim":     _init_trunk(ks[3], in_channel, F),
            "dir":     _init_trunk(ks[4], in_channel, F),
        }
        points = {                      # SubMConv3d 1x1 heads
            "heatmap":   _init_pointwise(ks[5], F, nc),
            "offset":    _init_pointwise(ks[6], F, 2),
            "depth":     _init_pointwise(ks[7], F, 1),
            "dim":       _init_pointwise(ks[8], F, 3),
            "alpha_cls": _init_pointwise(ks[9], F, ab),
            "alpha_reg": _init_pointwise(ks[10], F, ab),
        }

        # output column layout (heatmap first => sigmoid columns are a prefix)
        self.col_slices = {
            "heatmap":   (0, nc),
            "offset":    (nc, nc + 2),
            "depth":     (nc + 2, nc + 3),
            "dim":       (nc + 3, nc + 6),
            "alpha_cls": (nc + 6, nc + 6 + ab),
            "alpha_reg": (nc + 6 + ab, nc + 6 + 2 * ab),
        }
        c_total = nc + 6 + 2 * ab
        f_pad = _round_up(5 * F, 128)
        c_pad = _round_up(c_total, 128)

        trunk_order = ["heatmap", "offset", "depth", "dim", "dir"]
        head_to_trunk = {"heatmap": "heatmap", "offset": "offset", "depth": "depth",
                         "dim": "dim", "alpha_cls": "dir", "alpha_reg": "dir"}
        trunk_row = {t: i * F for i, t in enumerate(trunk_order)}

        w1_cat = np.zeros((K, f_pad), np.float32)       # concatenated first-stage weights
        shift_cat = np.zeros((1, f_pad), np.float32)
        w2_blk = np.zeros((f_pad, c_pad), np.float32)   # block-diagonal second-stage weights
        b2_cat = np.zeros((1, c_pad), np.float32)
        for t in trunk_order:
            r0 = trunk_row[t]
            w1s, shift = trunks[t]
            w1_cat[:, r0:r0 + F] = w1s
            shift_cat[0, r0:r0 + F] = shift
        for h, (w2, b2) in points.items():
            r0 = trunk_row[head_to_trunk[h]]
            c0, c1 = self.col_slices[h]
            w2_blk[r0:r0 + F, c0:c1] = w2
            b2_cat[0, c0:c1] = b2

        # fused, MXU-friendly parameters: bf16 GEMM operands, f32 shift/bias
        self.fused = dict(
            w1=jnp.asarray(w1_cat, jnp.bfloat16),
            shift=jnp.asarray(shift_cat, jnp.float32),
            w2=jnp.asarray(w2_blk, jnp.bfloat16),
            b2=jnp.asarray(b2_cat, jnp.float32),
        )
        # per-head copies (same bf16-folded values) for the pure-JAX reference
        self._ref_params = {
            h: dict(
                w1=jnp.asarray(trunks[head_to_trunk[h]][0], jnp.float32).astype(jnp.bfloat16),
                shift=jnp.asarray(trunks[head_to_trunk[h]][1], jnp.float32),
                w2=jnp.asarray(points[h][0], jnp.float32).astype(jnp.bfloat16),
                b2=jnp.asarray(points[h][1], jnp.float32),
            )
            for h in points
        }

    def __call__(self, feat_ncHWD):
        """feat: (B, C_in, H, W, D) float32 dense voxel features."""
        B, C, H, W, D = feat_ncHWD.shape
        x = jnp.transpose(feat_ncHWD, (0, 2, 3, 4, 1)).astype(jnp.bfloat16)
        # TODO(synk): the 27-tap neighborhood gather (im2col) is still an XLA-side op
        # materialized in HBM (bf16); an in-kernel halo conv / spconv rulebook is not done.
        patches = _im2col_3d(x)                               # (B, HWD, 27*C) bf16
        out = _fused_forward(self.fused, patches, self.num_classes, self.tile_m)

        def take(name):
            c0, c1 = self.col_slices[name]
            o = out[:, :, c0:c1]
            return o.reshape(B, H, W, D, c1 - c0).transpose(0, 4, 1, 2, 3)

        return (take("heatmap"), take("offset"), take("depth"),
                take("dim"), take("alpha_cls"), take("alpha_reg"))


# ----------------------------------------------------------------------------
# Pure-JAX per-head reference (same bf16-folded math; checks fused assembly too)
# ----------------------------------------------------------------------------
def _ref_head(patches_bf16, hp, apply_sigmoid):
    hi = jax.lax.Precision.HIGHEST
    p = patches_bf16.astype(jnp.float32)
    y = jnp.einsum("bnk,kf->bnf", p, hp["w1"].astype(jnp.float32), precision=hi)
    y = jnp.maximum(y + hp["shift"], 0.0)
    y = y.astype(jnp.bfloat16).astype(jnp.float32)
    out = jnp.einsum("bnf,fc->bnc", y, hp["w2"].astype(jnp.float32), precision=hi)
    out = out + hp["b2"]
    if apply_sigmoid:
        out = jnp.clip(jax.nn.sigmoid(out), 1e-4, 1.0 - 1e-4)
    return out


if __name__ == "__main__":
    B, Cin, H, W, D = 2, 8, 8, 8, 8
    feat_channel, num_classes, num_alpha_bins = 16, 3, 12

    root = jax.random.PRNGKey(0)
    k_feat, k_params = jax.random.split(root)
    feat = jax.random.normal(k_feat, (B, Cin, H, W, D), jnp.float32)

    head = M3DHeatMapHeadPallas(Cin, feat_channel, num_classes,
                                num_alpha_bins=num_alpha_bins, key=k_params,
                                tile_m=256)   # small tile so the HWD tiling path is exercised

    outs = jax.block_until_ready(head(feat))
    center_hm, off2d3d, depth_off, dim_pred, alpha_cls, alpha_reg = outs

    # shape checks (match PyTorch .dense() outputs)
    assert center_hm.shape == (B, num_classes, H, W, D)
    assert off2d3d.shape == (B, 2, H, W, D)
    assert depth_off.shape == (B, 1, H, W, D)
    assert dim_pred.shape == (B, 3, H, W, D)
    assert alpha_cls.shape == (B, num_alpha_bins, H, W, D)
    assert alpha_reg.shape == (B, num_alpha_bins, H, W, D)

    # numeric check vs per-head pure-JAX reference (validates fused weight assembly too)
    x_nhwdc = jnp.transpose(feat, (0, 2, 3, 4, 1)).astype(jnp.bfloat16)
    patches = _im2col_3d(x_nhwdc)
    checks = {
        "heatmap":   (center_hm, True),
        "offset":    (off2d3d, False),
        "depth":     (depth_off, False),
        "dim":       (dim_pred, False),
        "alpha_cls": (alpha_cls, False),
        "alpha_reg": (alpha_reg, False),
    }
    for name, (got, sig) in checks.items():
        ref = _ref_head(patches, head._ref_params[name], sig)
        ref = ref.reshape(B, H, W, D, ref.shape[-1]).transpose(0, 4, 1, 2, 3)
        np.testing.assert_allclose(np.asarray(got), np.asarray(ref),
                                   rtol=2e-2, atol=2e-2)

    print("KERNEL_OK")
</pallas_src>

<mosaic_0001>
module attributes {stable_mosaic.version = 11 : i64} {
  func.func @kernel(%arg0: i32, %arg1: i32, %arg2: memref<1x256x216xbf16, #tpu.memory_space<vmem>>, %arg3: memref<216x128xbf16, #tpu.memory_space<vmem>>, %arg4: memref<1x128xf32, #tpu.memory_space<vmem>>, %arg5: memref<128x128xbf16, #tpu.memory_space<vmem>>, %arg6: memref<1x128xf32, #tpu.memory_space<vmem>>, %arg7: memref<1x256x128xf32, #tpu.memory_space<vmem>>) attributes {dimension_semantics = [#tpu.dimension_semantics<parallel>, #tpu.dimension_semantics<parallel>], iteration_bounds = array<i64: 2, 2>, scalar_prefetch = 0 : i64, scratch_operands = 0 : i64, tpu.core_type = #tpu.core_type<tc>, window_params = [{transform_indices = @transform_0, window_bounds = array<i64: 1, 256, 216>}, {pipeline_mode = #tpu.pipeline_mode<synchronous>, transform_indices = @transform_1, window_bounds = array<i64: 216, 128>}, {pipeline_mode = #tpu.pipeline_mode<synchronous>, transform_indices = @transform_2, window_bounds = array<i64: 1, 128>}, {pipeline_mode = #tpu.pipeline_mode<synchronous>, transform_indices = @transform_3, window_bounds = array<i64: 128, 128>}, {pipeline_mode = #tpu.pipeline_mode<synchronous>, transform_indices = @transform_4, window_bounds = array<i64: 1, 128>}, {transform_indices = @transform_5, window_bounds = array<i64: 1, 256, 128>}]} {
    %c0 = arith.constant 0 : index
    %c0_0 = arith.constant 0 : index
    %c0_1 = arith.constant 0 : index
    %0 = vector.load %arg2[%c0, %c0_0, %c0_1] : memref<1x256x216xbf16, #tpu.memory_space<vmem>>, vector<1x256x216xbf16>
    %1 = vector.shape_cast %0 : vector<1x256x216xbf16> to vector<256x216xbf16>
    %c0_2 = arith.constant 0 : index
    %c0_3 = arith.constant 0 : index
    %2 = vector.load %arg3[%c0_2, %c0_3] : memref<216x128xbf16, #tpu.memory_space<vmem>>, vector<216x128xbf16>
    %cst = arith.constant dense<0.000000e+00> : vector<256x128xf32>
    %3 = tpu.matmul %1, %2, %cst {dimension_numbers = #tpu.dot_dimension_numbers<[1], [0], [0], [1], [0, 0, 1, 1], [], []>} : vector<256x216xbf16>, vector<216x128xbf16>, vector<256x128xf32> -> vector<256x128xf32>
    %c0_4 = arith.constant 0 : index
    %c0_5 = arith.constant 0 : index
    %4 = vector.load %arg4[%c0_4, %c0_5] : memref<1x128xf32, #tpu.memory_space<vmem>>, vector<1x128xf32>
    %5 = vector.broadcast %4 : vector<1x128xf32> to vector<256x128xf32>
    %6 = arith.addf %3, %5 : vector<256x128xf32>
    %cst_6 = arith.constant 0.000000e+00 : f32
    %7 = vector.broadcast %cst_6 : f32 to vector<256x128xf32>
    %8 = arith.maximumf %6, %7 : vector<256x128xf32>
    %9 = arith.truncf %8 : vector<256x128xf32> to vector<256x128xbf16>
    %c0_7 = arith.constant 0 : index
    %c0_8 = arith.constant 0 : index
    %10 = vector.load %arg5[%c0_7, %c0_8] : memref<128x128xbf16, #tpu.memory_space<vmem>>, vector<128x128xbf16>
    %cst_9 = arith.constant dense<0.000000e+00> : vector<256x128xf32>
    %11 = tpu.matmul %9, %10, %cst_9 {dimension_numbers = #tpu.dot_dimension_numbers<[1], [0], [0], [1], [0, 0, 1, 1], [], []>} : vector<256x128xbf16>, vector<128x128xbf16>, vector<256x128xf32> -> vector<256x128xf32>
    %c0_10 = arith.constant 0 : index
    %c0_11 = arith.constant 0 : index
    %12 = vector.load %arg6[%c0_10, %c0_11] : memref<1x128xf32, #tpu.memory_space<vmem>>, vector<1x128xf32>
    %13 = vector.broadcast %12 : vector<1x128xf32> to vector<256x128xf32>
    %14 = arith.addf %11, %13 : vector<256x128xf32>
    %15 = tpu.iota {dimensions = array<i32: 1>} : vector<256x128xi32>
    %16 = arith.negf %14 : vector<256x128xf32>
    %17 = math.exp %16 : vector<256x128xf32>
    %cst_12 = arith.constant 1.000000e+00 : f32
    %18 = vector.broadcast %cst_12 : f32 to vector<256x128xf32>
    %19 = arith.addf %18, %17 : vector<256x128xf32>
    %20 = arith.divf %18, %19 : vector<256x128xf32>
    %cst_13 = arith.constant 9.99999974E-5 : f32
    %cst_14 = arith.constant 0.999899983 : f32
    %21 = vector.broadcast %cst_13 : f32 to vector<256x128xf32>
    %22 = arith.maximumf %21, %20 : vector<256x128xf32>
    %23 = vector.broadcast %cst_14 : f32 to vector<256x128xf32>
    %24 = arith.minimumf %23, %22 : vector<256x128xf32>
    %c3_i32 = arith.constant 3 : i32
    %25 = vector.broadcast %c3_i32 : i32 to vector<256x128xi32>
    %26 = arith.cmpi slt, %15, %25 : vector<256x128xi32>
    %27 = arith.select %26, %24, %14 : vector<256x128xi1>, vector<256x128xf32>
    %c0_15 = arith.constant 0 : index
    %c0_16 = arith.constant 0 : index
    %c0_17 = arith.constant 0 : index
    %28 = vector.load %arg7[%c0_15, %c0_16, %c0_17] : memref<1x256x128xf32, #tpu.memory_space<vmem>>, vector<1x256x128xf32>
    %29 = vector.shape_cast %28 : vector<1x256x128xf32> to vector<256x128xf32>
    %30 = vector.shape_cast %27 : vector<256x128xf32> to vector<1x256x128xf32>
    tpu.vector_store %arg7[%c0_15, %c0_16, %c0_17], %30 {strides = array<i32>} : memref<1x256x128xf32, #tpu.memory_space<vmem>>, vector<1x256x128xf32>,
    return
  }
  func.func @transform_0(%arg0: i32, %arg1: i32) -> (i32, i32, i32) {
    %c0_i32 = arith.constant 0 : i32
    %c0_i32_0 = arith.constant 0 : i32
    return %arg0, %arg1, %c0_i32 : i32, i32, i32
  }
  func.func @transform_1(%arg0: i32, %arg1: i32) -> (i32, i32) {
    %c0_i32 = arith.constant 0 : i32
    %c0_i32_0 = arith.constant 0 : i32
    %c0_i32_1 = arith.constant 0 : i32
    return %c0_i32, %c0_i32_0 : i32, i32
  }
  func.func @transform_2(%arg0: i32, %arg1: i32) -> (i32, i32) {
    %c0_i32 = arith.constant 0 : i32
    %c0_i32_0 = arith.constant 0 : i32
    %c0_i32_1 = arith.constant 0 : i32
    return %c0_i32, %c0_i32_0 : i32, i32
  }
  func.func @transform_3(%arg0: i32, %arg1: i32) -> (i32, i32) {
    %c0_i32 = arith.constant 0 : i32
    %c0_i32_0 = arith.constant 0 : i32
    %c0_i32_1 = arith.constant 0 : i32
    return %c0_i32, %c0_i32_0 : i32, i32
  }
  func.func @transform_4(%arg0: i32, %arg1: i32) -> (i32, i32) {
    %c0_i32 = arith.constant 0 : i32
    %c0_i32_0 = arith.constant 0 : i32
    %c0_i32_1 = arith.constant 0 : i32
    return %c0_i32, %c0_i32_0 : i32, i32
  }
  func.func @transform_5(%arg0: i32, %arg1: i32) -> (i32, i32, i32) {
    %c0_i32 = arith.constant 0 : i32
    %c0_i32_0 = arith.constant 0 : i32
    return %arg0, %arg1, %c0_i32 : i32, i32, i32
  }
}

</mosaic_0001>

<bundles_post_ra>
// kernel: tpu_custom_call.1
= control target key start
LH: loop header
LB: loop body
LE: loop exit
PB: predicated region body
PF: predicated region fallthrough
CT: control target
= control target key end

     0   :  { %10 = vsyncpa [#allocation3], 0  ;;  %s3191_s0 = inlined_call_operand.vmem [shape: bf16[2,512,216], index: 0, kind: input, shape index: {}]   ;;  %s3192_s1 = inlined_call_operand.vmem [shape: bf16[216,128], index: 1, kind: input, shape index: {}]   ;;  %s3193_s2 = inlined_call_operand.vmem [shape: f32[1,128], index: 2, kind: input, shape index: {}]   ;;  %s3194_s3 = inlined_call_operand.vmem [shape: bf16[128,128], index: 3, kind: input, shape index: {}]   ;;  %s3195_s4 = inlined_call_operand.vmem [shape: f32[1,128], index: 4, kind: input, shape index: {}]   ;;  %s3196_s5 = inlined_call_operand.hbm [shape: f32[2,512,128], index: 5, kind: output, shape index: {}]  }
   0x1   :  { %12 = vsyncpa [#allocation3 + $0x1], 0  ;;  %s2507_s18 = smov 0   ;;  %s2509_s19 = smov 0  }
   0x2   :  { %s2511_s20 = smov 0   ;;  %s2513_s21 = smov 0  }
   0x3   :  { %s2515_s22 = smov 0   ;;  %s2517_s23 = smov 0  }
   0x4   :  { %s2519_s24 = smov 0   ;;  %s2521_s25 = smov 0  }
   0x5 LB: > { %s1824_s26 = sadd.s32 4294967295, %s2473_s25   ;;  %s1825_s27 = sadd.s32 4294967294, %s2473_s25   ;;  %s2473_s25 = sphi %s2521_s25, %s18_s25   ;;  %s2469_s24 = sphi %s2519_s24, %s3208_s24   ;;  %s2465_s23 = sphi %s2517_s23, %s3207_s23   ;;  %s2461_s22 = sphi %s2515_s22, %s3206_s22   ;;  %s2457_s21 = sphi %s2513_s21, %s3205_s21   ;;  %s2453_s20 = sphi %s2511_s20, %s3204_s20   ;;  %s2449_s19 = sphi %s2509_s19, %s3203_s19   ;;  %s2445_s18 = sphi %s2507_s18, %s3202_s18  }
   0x6   : > { %s27_s28 = sadd.s32 1, %s2465_s23  ;;  %s30_s29 = sadd.s32 1, %s2469_s24 }
   0x7   : > { %p28_p0 = scmp.ge.s32.totalorder %s27_s28, 2  ;;  %p161_p1 = scmp.ne.s32.totalorder %s2453_s20, %s2449_s19 }
   0x8   : > { %p162_p2 = scmp.eq.s32.totalorder %s1824_s26, 3  ;;  %p167_p5 = scmp.ne.s32.totalorder %s2449_s19, %s2445_s18 }
   0x9   : > { %s3210_s28 = smov (%p28_p0, %s27_s28), 0  ;;  %s3212_s29 = smov (!%p28_p0, %s30_s29), %s2469_s24 }
   0xa   : > { %s147_s30 = ssub.s32 %s2465_s23, %s3210_s28  ;;  %p2558_p3 = por %p162_p2, %p161_p1 }
   0xb   : > { %p32_p4 = scmp.ge.s32.totalorder %s3212_s29, 2  ;;  %p168_p6 = scmp.eq.s32.totalorder %s1825_s27, 3 }
   0xc   : > { %p1828_p7 = scmp.ge.s32.totalorder %s2473_s25, 1  ;;  %p212_p9 = scmp.lt.s32.totalorder %s2473_s25, 5 }
   0xd   : > { %s3214_s29 = smov (%p32_p4, %s3212_s29), 0  ;;  %p2567_p8 = por %p168_p6, %p167_p5 }
   0xe   : > { %3199 = sst [smem:[#allocation5_spill]] %s3214_s29  ;;  %s146_s8 = ssub.s32 %s2469_s24, %s3214_s29 }
   0xf   : > { %s151_s9 = sadd.s32 1, %s2453_s20  ;;  %s148_s10 = sor.u32 %s147_s30, %s146_s8 }
  0x10   : > { %p213_p10 = pnand %p1828_p7, %p212_p9  ;;  %p149_p11 = scmp.eq.s32.totalorder %s148_s10, 0 }
  0x11   : > { %s2585_s16 = sshll.u32 (!%p213_p10), %s2457_s21, 5  ;;  %p246_p12 = scmp.lt.s32.totalorder (!%p213_p10), %s2461_s22, 1 }
  0x12   : > { %s2576_s11 = scalar_select %p149_p11, %s2453_s20, %s151_s9  }
  0x13   : > { %216 = sbr.rel (%p213_p10) target bundleno = 614 (0x266), region = 40  ;;  %p248_p13 = scmp.lt.s32.totalorder (!%p213_p10), %s2585_s16, 63 }
  0x14   : > { %s2096_s13 = sshll.u32 (!%p213_p10), %s2461_s22, 6 }
  0x15   : > { %s1733_s14 = sadd.s32 (!%p213_p10), %s2096_s13, %s2585_s16  ;;  %s2399_s13 = scalar_lea.hbm (!%p213_p10), %s3196_s5, 1024 }
  0x18   : > { %v2139_v0 = vld [vmem:[%s3192_s1 + $0x38] sm:$0xff]  ;;  %v316_v1 = vld [vmem:[%s3192_s1 + $0x68] sm:$0xf]  ;;  %vm595_vm0 = vcmask 1043456   ;;  %v2138_v3 = vld [vmem:[%s3192_s1 + $0x30] sm:$0xff]  ;;  %s247_s27 = scalar_select %p246_p12, %s2461_s22, 1 }
  0x19   : > { %v518_v2 = vunpack.c.l.b16 %v316_v1  ;;  %599 = vmatpush.bf16.msra.mxu0 %v2139_v0  ;;  %2153 = vmatpush.bf16.msra.mxu3 %v2139_v0  ;;  %v2144_v6 = vld [vmem:[%s3192_s1 + $0x60] sm:$0xff]  ;;  %v2137_v7 = vld [vmem:[%s3192_s1 + $0x28] sm:$0xff]  ;;  %s249_s10 = scalar_select %p248_p13, %s2585_s16, 63  ;;  %v2143_v8 = vld [vmem:[%s3192_s1 + $0x58] sm:$0xff]  ;;  %vm546_vm1 = vcmask 719872  }
  0x1a   : > { %v2136_v9 = vld [vmem:[%s3192_s1 + $0x20] sm:$0xff]  ;;  %s1832_s26 = sshll.u32 %s247_s27, 7  ;;  %v2142_v10 = vld [vmem:[%s3192_s1 + $0x50] sm:$0xff]  ;;  %v2135_v11 = vld [vmem:[%s3192_s1 + $0x18] sm:$0xff]  ;;  %s2097_s27 = sshll.u32 %s1733_s14, 3 }
  0x1b   : > { %v532_v4 = vpack.c.b16 %v518_v2, %v518_v2  ;;  %s1831_s17 = sshll.u32 %s249_s10, 1  ;;  %v2141_v12 = vld [vmem:[%s3192_s1 + $0x48] sm:$0xff]  ;;  %v2134_v13 = vld [vmem:[%s3192_s1 + $0x10] sm:$0xff]  ;;  %v2140_v14 = vld [vmem:[%s3192_s1 + $0x40] sm:$0xff]  ;;  %s1735_s16 = scalar_lea.hbm %s3196_s5, %s2097_s27 }
  0x1c   : > { %s252_s30 = sadd.s32 %s1832_s26, %s1831_s17  ;;  %v2133_v15 = vld [vmem:[%s3192_s1 + $0x8] sm:$0xff]  ;;  %v2132_v19 = vld [vmem:[%s3192_s1] sm:$0xff]  ;;  %v2152_v61 = vld [vmem:[%s3194_s3 + $0x38] sm:$0xff]  ;;  %s1738_s17 = sshll.u32 %s1735_s16, 4  ;;  %s1739_s17 = int_to_ptr.hbm [resolvable:$true] %s1738_s17 }
  0x1d   : > { %v597_v5 = vsel %vm595_vm0, %v532_v4, 0  ;;  %600 = vmatpush.bf16.msra.mxu0 %v2138_v3  ;;  %2154 = vmatpush.bf16.msra.mxu3 %v2138_v3  ;;  %s1833_s12 = sshll.u32 %s252_s30, 2  ;;  %v2151_v63 = vld [vmem:[%s3194_s3 + $0x30] sm:$0xff]  ;;  %v2150_v0 = vld [vmem:[%s3194_s3 + $0x28] sm:$0xff]  ;;  %s242_s30 = sand.u32 1, %s2449_s19  }
  0x1e   : > { %690 = vmatpush.bf16.msra.mxu1 %v597_v5  ;;  %s2621_s26 = scalar_lea.vmem %s3191_s0, %s1833_s12  ;;  %893 = vmatpush.bf16.msra.mxu2 %v2152_v61  ;;  %s1829_s21 = sshll.u32 %s242_s30, 8 }
  0x1f   : > { %v2100_v16 = vld [vmem:[%s2621_s26 + $0x4] sm:$0xf]  ;;  %v1838_v17 = vld [vmem:[%s2621_s26 + $0x8] sm:$0xf0]  ;;  %v1836_v20 = vld [vmem:[%s2621_s26] sm:$0xf] }
  0x20   : > { %v1841_v18 = vor.u32 %v2100_v16, %v1838_v17  ;;  %v2101_v21 = vld [vmem:[%s2621_s26 + $0x4] sm:$0xf0]  ;;  %v2102_v23 = vld [vmem:[%s2621_s26 + $0x14] sm:$0xf]  ;;  %v1846_v24 = vld [vmem:[%s2621_s26 + $0x18] sm:$0xf0] }
  0x21   : > { %601 = vmatpush.bf16.msra.mxu0 %v2137_v7  ;;  %2155 = vmatpush.bf16.msra.mxu3 %v2137_v7  ;;  %v1837_v22 = vor.u32 %v2101_v21, %v1836_v20  ;;  %v1849_v25 = vor.u32 %v2102_v23, %v1846_v24  ;;  %v1844_v26 = vld [vmem:[%s2621_s26 + $0x10] sm:$0xf]  ;;  %v2103_v27 = vld [vmem:[%s2621_s26 + $0x14] sm:$0xf0]  ;;  %v2104_v29 = vld [vmem:[%s2621_s26 + $0x24] sm:$0xf] }
  0x22   : > { %691 = vmatpush.bf16.msra.mxu1 %v2144_v6  ;;  %v1845_v28 = vor.u32 %v2103_v27, %v1844_v26  ;;  %v1854_v30 = vld [vmem:[%s2621_s26 + $0x28] sm:$0xf0]  ;;  %v1852_v32 = vld [vmem:[%s2621_s26 + $0x20] sm:$0xf]  ;;  %v2105_v33 = vld [vmem:[%s2621_s26 + $0x24] sm:$0xf0]  ;;  %894 = vmatpush.bf16.msra.mxu2 %v2151_v63 }
  0x23   : > { %v1857_v31 = vor.u32 %v2104_v29, %v1854_v30  ;;  %v1853_v34 = vor.u32 %v2105_v33, %v1852_v32  ;;  %v2106_v35 = vld [vmem:[%s2621_s26 + $0x34] sm:$0xf]  ;;  %v1862_v36 = vld [vmem:[%s2621_s26 + $0x38] sm:$0xf0]  ;;  %v1860_v38 = vld [vmem:[%s2621_s26 + $0x30] sm:$0xf] }
  0x24   : > { %v1865_v37 = vor.u32 %v2106_v35, %v1862_v36  ;;  %v2107_v39 = vld [vmem:[%s2621_s26 + $0x34] sm:$0xf0]  ;;  %v1932_v41 = vld [vmem:[%s2621_s26 + $0xc0] sm:$0xf]  ;;  %v2125_v42 = vld [vmem:[%s2621_s26 + $0xc4] sm:$0xf0] }
  0x25   : > { %602 = vmatpush.bf16.msra.mxu0 %v2136_v9  ;;  %2156 = vmatpush.bf16.msra.mxu3 %v2136_v9  ;;  %v1861_v40 = vor.u32 %v2107_v39, %v1860_v38  ;;  %v1933_v43 = vor.u32 %v2125_v42, %v1932_v41  ;;  %v2108_v44 = vld [vmem:[%s2621_s26 + $0x44] sm:$0xf]  ;;  %v1870_v45 = vld [vmem:[%s2621_s26 + $0x48] sm:$0xf0]  ;;  %v1868_v47 = vld [vmem:[%s2621_s26 + $0x40] sm:$0xf] }
  0x26   : > { %692 = vmatpush.bf16.msra.mxu1 %v2143_v8  ;;  %v1873_v46 = vor.u32 %v2108_v44, %v1870_v45  ;;  %v2109_v48 = vld [vmem:[%s2621_s26 + $0x44] sm:$0xf0]  ;;  %v1940_v50 = vld [vmem:[%s2621_s26 + $0xd0] sm:$0xf]  ;;  %v2127_v51 = vld [vmem:[%s2621_s26 + $0xd4] sm:$0xf0]  ;;  %895 = vmatpush.bf16.msra.mxu2 %v2150_v0 }
  0x27   : > { %v1869_v49 = vor.u32 %v2109_v48, %v1868_v47  ;;  %v1941_v52 = vor.u32 %v2127_v51, %v1940_v50  ;;  %v2110_v53 = vld [vmem:[%s2621_s26 + $0x54] sm:$0xf]  ;;  %v1878_v54 = vld [vmem:[%s2621_s26 + $0x58] sm:$0xf0]  ;;  %v1876_v56 = vld [vmem:[%s2621_s26 + $0x50] sm:$0xf] }
  0x28   : > { %v1881_v55 = vor.u32 %v2110_v53, %v1878_v54  ;;  %v2111_v57 = vld [vmem:[%s2621_s26 + $0x54] sm:$0xf0]  ;;  %v1948_v59 = vld [vmem:[%s2621_s26 + $0xe0] sm:$0xf]  ;;  %v2129_v60 = vld [vmem:[%s2621_s26 + $0xe4] sm:$0xf0] }
  0x29   : > { %603 = vmatpush.bf16.msra.mxu0 %v2135_v11  ;;  %2157 = vmatpush.bf16.msra.mxu3 %v2135_v11  ;;  %v1877_v58 = vor.u32 %v2111_v57, %v1876_v56  ;;  %v1949_v62 = vor.u32 %v2129_v60, %v1948_v59  ;;  %v2112_v1 = vld [vmem:[%s2621_s26 + $0x64] sm:$0xf]  ;;  %v1886_v2 = vld [vmem:[%s2621_s26 + $0x68] sm:$0xf0]  ;;  %v1884_v4 = vld [vmem:[%s2621_s26 + $0x60] sm:$0xf] }
  0x2a   : > { %693 = vmatpush.bf16.msra.mxu1 %v2142_v10  ;;  %v1889_v3 = vor.u32 %v2112_v1, %v1886_v2  ;;  %v2131_v9 = vld [vmem:[%s2621_s26 + $0xf4] sm:$0xf0]  ;;  %v1892_v17 = vld [vmem:[%s2621_s26 + $0x70] sm:$0xf]  ;;  %v2126_v21 = vld [vmem:[%s2621_s26 + $0xd4] sm:$0xf] }
  0x2b   : > { %v2116_v24 = vld [vmem:[%s2621_s26 + $0x84] sm:$0xf]  ;;  %v2117_v29 = vld [vmem:[%s2621_s26 + $0x84] sm:$0xf0]  ;;  %v1950_v33 = vld [vmem:[%s2621_s26 + $0xe8] sm:$0xf0] }
  0x2c   : > { %v2128_v32 = vld [vmem:[%s2621_s26 + $0xe4] sm:$0xf]  ;;  %v2118_v39 = vld [vmem:[%s2621_s26 + $0x94] sm:$0xf]  ;;  %v2119_v47 = vld [vmem:[%s2621_s26 + $0x94] sm:$0xf0] }
  0x2d   : > { %604 = vmatpush.bf16.msra.mxu0 %v2134_v13  ;;  %2158 = vmatpush.bf16.msra.mxu3 %v2134_v13  ;;  %v2114_v13 = vld [vmem:[%s2621_s26 + $0x74] sm:$0xf]  ;;  %v1953_v35 = vor.u32 %v2128_v32, %v1950_v33  ;;  %v1958_v54 = vld [vmem:[%s2621_s26 + $0xf8] sm:$0xf0]  ;;  %v2120_v59 = vld [vmem:[%s2621_s26 + $0xa4] sm:$0xf] }
  0x2e   : > { %694 = vmatpush.bf16.msra.mxu1 %v2141_v12  ;;  %v2130_v53 = vld [vmem:[%s2621_s26 + $0xf4] sm:$0xf]  ;;  %v1918_v60 = vld [vmem:[%s2621_s26 + $0xa8] sm:$0xf0]  ;;  %v1916_v2 = vld [vmem:[%s2621_s26 + $0xa0] sm:$0xf] }
  0x2f   : > { %s2823_s8 = scalar_lea.vmem [#allocation2], %s1829_s21  ;;  %s2393_s29 = sshra.s32 %s1739_s17, 4  ;;  %s2394_s29 = int_to_ptr.hbm [resolvable:$true] %s2393_s29 }
  0x30   : > { %s1736_s15 = sshll.u32 %s2823_s8, 4  ;;  %s2395_s21 = scalar_lea.hbm %s2394_s29, 256  ;;  %s1737_s15 = int_to_ptr.vmem [resolvable:$true] %s1736_s15 }
  0x31   : > { %605 = vmatpush.bf16.msra.mxu0 %v2133_v15  ;;  %2159 = vmatpush.bf16.msra.mxu3 %v2133_v15  ;;  %v2146_v15 = vld [vmem:[%s3194_s3 + $0x8] sm:$0xff]  ;;  %p2396_p0 = scmp.ne.s32.totalorder %s2394_s29, %s2395_s21  ;;  %p2400_p4 = scmp.lt.s32.totalorder %s2394_s29, %s3196_s5 }
  0x32   : > { %695 = vmatpush.bf16.msra.mxu1 %v2140_v14  ;;  %p2401_p5 = scmp.lt.s32.totalorder %s2399_s13, %s2395_s21 }
  0x33   : > { %p2397_p1 = pnand %p2396_p0, %p2558_p3 }
  0x34   : > { %p2402_p6 = por %p2401_p5, %p2400_p4 }
  0x35   : > { %2014 = vmatmul.msk.bf16.vlgmr.msra.gmra.mxu1 %vm546_vm1, %v1841_v18  ;;  %606 = vmatpush.bf16.msra.mxu0 %v2132_v19  ;;  %v2115_v18 = vld [vmem:[%s2621_s26 + $0x74] sm:$0xf0]  ;;  %p2398_p2 = pneg %p2397_p1 }
  0x36   : > { %2160 = vmatpush.bf16.msra.mxu3 %v2132_v19  ;;  %v2145_v19 = vld [vmem:[%s3194_s3] sm:$0xff]  ;;  %v1893_v20 = vor.u32 %v2115_v18, %v1892_v17 }
  0x37   : > { %p2403_p7 = pnand %p2402_p6, %p2398_p2 }
  0x38   : > { %607 = vmatmul.bf16.vlgmr.msra.gmra.mxu0 %v1837_v22  ;;  %v1942_v22 = vld [vmem:[%s2621_s26 + $0xd8] sm:$0xf0] }
  0x39   : > { %667 = vmatmul.bf16.vlgmr.msra.gmra.mxu3 %v1933_v43  ;;  %v1945_v23 = vor.u32 %v2126_v21, %v1942_v22 }
  0x3a   : > { %2161 = vmatpush.bf16.msrb.mxu3 %v597_v5  ;;  %v2113_v5 = vld [vmem:[%s2621_s26 + $0x64] sm:$0xf0] }
  0x3b   : > { %v1885_v7 = vor.u32 %v2113_v5, %v1884_v4 }
  0x3e   : > { %2162 = vmatpush.bf16.msrb.mxu3 %v2144_v6  ;;  %v2149_v6 = vld [vmem:[%s3194_s3 + $0x20] sm:$0xff] }
  0x3f   : > { %896 = vmatpush.bf16.msra.mxu2 %v2149_v6 }
  0x42   : > { %2163 = vmatpush.bf16.msrb.mxu3 %v2143_v8  ;;  %v1956_v8 = vld [vmem:[%s2621_s26 + $0xf0] sm:$0xf] }
  0x43   : > { %v1957_v11 = vor.u32 %v2131_v9, %v1956_v8 }
  0x45   : > { %2015 = vmatmul.msk.bf16.gmra.mxu1 %vm546_vm1, %v1849_v25  ;;  %v1902_v25 = vld [vmem:[%s2621_s26 + $0x88] sm:$0xf0] }
  0x46   : > { %2164 = vmatpush.bf16.msrb.mxu3 %v2142_v10  ;;  %v2148_v10 = vld [vmem:[%s3194_s3 + $0x18] sm:$0xff]  ;;  %v1905_v26 = vor.u32 %v2116_v24, %v1902_v25 }
  0x47   : > { %897 = vmatpush.bf16.msra.mxu2 %v2148_v10 }
  0x48   : > { %612 = vmatmul.bf16.gmra.mxu0 %v1845_v28  ;;  %v1900_v28 = vld [vmem:[%s2621_s26 + $0x80] sm:$0xf] }
  0x49   : > { %672 = vmatmul.bf16.gmra.mxu3 %v1941_v52  ;;  %v1901_v30 = vor.u32 %v2117_v29, %v1900_v28  ;;  %v2124_v29 = vld [vmem:[%s2621_s26 + $0xc4] sm:$0xf] }
  0x4a   : > { %2165 = vmatpush.bf16.msrb.mxu3 %v2141_v12  ;;  %v2147_v12 = vld [vmem:[%s3194_s3 + $0x10] sm:$0xff] }
  0x4b   : > { %898 = vmatpush.bf16.msra.mxu2 %v2147_v12 }
  0x4e   : > { %2166 = vmatpush.bf16.msrb.mxu3 %v2140_v14  ;;  %v1894_v14 = vld [vmem:[%s2621_s26 + $0x78] sm:$0xf0] }
  0x4f   : > { %899 = vmatpush.bf16.msra.mxu2 %v2146_v15  ;;  %v1897_v16 = vor.u32 %v2114_v13, %v1894_v14  ;;  %v1926_v13 = vld [vmem:[%s2621_s26 + $0xb8] sm:$0xf0] }
  0x52   : > { %2167 = vmatpush.bf16.msra.mxu3 %v2152_v61 }
  0x53   : > { %900 = vmatpush.bf16.msra.mxu2 %v2145_v19 }
  0x55   : > { %2016 = vmatmul.msk.bf16.gmra.mxu1 %vm546_vm1, %v1857_v31 }
  0x56   : > { %2168 = vmatpush.bf16.msra.mxu3 %v2151_v63 }
  0x58   : > { %617 = vmatmul.bf16.gmra.mxu0 %v1853_v34  ;;  %v2717_v34 = vld [vmem:[%s3193_s2] ss:$0 sm:$0xff] }
  0x59   : > { %677 = vmatmul.bf16.gmra.mxu3 %v1949_v62 }
  0x5a   : > { %2169 = vmatpush.bf16.msra.mxu3 %v2150_v0  ;;  %v1921_v0 = vor.u32 %v2120_v59, %v1918_v60 }
  0x5e   : > { %2170 = vmatpush.bf16.msra.mxu3 %v2149_v6 }
  0x62   : > { %2171 = vmatpush.bf16.msra.mxu3 %v2148_v10 }
  0x65   : > { %2017 = vmatmul.msk.bf16.gmra.mxu1 %vm546_vm1, %v1865_v37 }
  0x66   : > { %2172 = vmatpush.bf16.msra.mxu3 %v2147_v12  ;;  %v2122_v12 = vld [vmem:[%s2621_s26 + $0xb4] sm:$0xf] }
  0x67   : > { %v1929_v17 = vor.u32 %v2122_v12, %v1926_v13 }
  0x68   : > { %622 = vmatmul.bf16.gmra.mxu0 %v1861_v40  ;;  %v1910_v40 = vld [vmem:[%s2621_s26 + $0x98] sm:$0xf0] }
  0x69   : > { %682 = vmatmul.bf16.gmra.mxu3 %v1957_v11  ;;  %v1913_v44 = vor.u32 %v2118_v39, %v1910_v40 }
  0x6a   : > { %2173 = vmatpush.bf16.msra.mxu3 %v2146_v15 }
  0x6e   : > { %2174 = vmatpush.bf16.msra.mxu3 %v2145_v19  ;;  %v1924_v19 = vld [vmem:[%s2621_s26 + $0xb0] sm:$0xf] }
  0x75   : > { %2018 = vmatmul.msk.bf16.gmra.mxu1 %vm546_vm1, %v1873_v46  ;;  %v1908_v46 = vld [vmem:[%s2621_s26 + $0x90] sm:$0xf] }
  0x76   : > { %v1909_v51 = vor.u32 %v2119_v47, %v1908_v46 }
  0x78   : > { %627 = vmatmul.bf16.gmra.mxu0 %v1869_v49 }
  0x79   : > { %2027 = vmatmul.msk.bf16.vlgmr.msrb.gmra.mxu3 %vm546_vm1, %v1945_v23 }
  0x85   : > { %2019 = vmatmul.msk.bf16.gmra.mxu1 %vm546_vm1, %v1881_v55  ;;  %v1961_v55 = vor.u32 %v2130_v53, %v1958_v54 }
  0x88   : > { %632 = vmatmul.bf16.gmra.mxu0 %v1877_v58 }
  0x89   : > { %2028 = vmatmul.msk.bf16.gmra.mxu3 %vm546_vm1, %v1953_v35 }
  0x95   : > { %2020 = vmatmul.msk.bf16.gmra.mxu1 %vm546_vm1, %v1889_v3  ;;  %v2121_v3 = vld [vmem:[%s2621_s26 + $0xa4] sm:$0xf0] }
  0x98   : > { %637 = vmatmul.bf16.gmra.mxu0 %v1885_v7  ;;  %v1917_v7 = vor.u32 %v2121_v3, %v1916_v2 }
  0x99   : > { %2029 = vmatmul.msk.bf16.gmra.mxu3 %vm546_vm1, %v1961_v55 }
  0xa5   : > { %2021 = vmatmul.msk.bf16.gmra.mxu1 %vm546_vm1, %v1897_v16 }
  0xa8   : > { %642 = vmatmul.bf16.gmra.mxu0 %v1893_v20  ;;  %v2123_v20 = vld [vmem:[%s2621_s26 + $0xb4] sm:$0xf0] }
  0xa9   : > { %v1925_v24 = vor.u32 %v2123_v20, %v1924_v19 }
  0xb2   : > { %v697_v27 = vpop.f32.mrf.mxu1 }
  0xb5   : > { %2022 = vmatmul.msk.bf16.gmra.mxu1 %vm546_vm1, %v1905_v26  ;;  %v608_v31 = vpop.f32.mrf.mxu0 }
  0xb6   : > { %v609_v37 = vadd.f32 %v2717_v34, %v608_v31 }
  0xb8   : > { %647 = vmatmul.bf16.gmra.mxu0 %v1901_v30  ;;  %v698_v41 = vadd.f32 %v697_v27, %v609_v37  ;;  %v1934_v30 = vld [vmem:[%s2621_s26 + $0xc8] sm:$0xf0]  ;;  %s1722_s26 = scalar_lea.sflag [#allocation3], %s242_s30 }
  0xb9   : > { %v1937_v35 = vor.u32 %v2124_v29, %v1934_v30 }
  0xba   : > { %v699_v36 = vpop.f32.mrf.mxu1  ;;  %v777_v48 = vmax.f32 %v698_v41, 0.0 }
  0xbd   : > { %v610_v38 = vpop.f32.mrf.mxu0 }
  0xbe   : > { %v611_v42 = vadd.f32 %v2717_v34, %v610_v38 }
  0xc0   : > { %v700_v43 = vadd.f32 %v699_v36, %v611_v42 }
  0xc2   : > { %v702_v45 = vpop.f32.mrf.mxu1  ;;  %v778_v49 = vmax.f32 %v700_v43, 0.0 }
  0xc4   : > { %v809_v50 = vpack.c.bf16 %v778_v49, %v777_v48 }
  0xc5   : > { %2023 = vmatmul.msk.bf16.gmra.mxu1 %vm546_vm1, %v1913_v44  ;;  %v613_v52 = vpop.f32.mrf.mxu0 }
  0xc6   : > { %901 = vmatmul.bf16.vlgmr.msra.gmra.mxu2 %v809_v50  ;;  %v614_v57 = vadd.f32 %v2717_v34, %v613_v52 }
  0xc8   : > { %652 = vmatmul.bf16.gmra.mxu0 %v1909_v51  ;;  %v703_v61 = vadd.f32 %v702_v45, %v614_v57 }
  0xca   : > { %v704_v56 = vpop.f32.mrf.mxu1  ;;  %v779_v4 = vmax.f32 %v703_v61, 0.0 }
  0xcd   : > { %v615_v58 = vpop.f32.mrf.mxu0 }
  0xce   : > { %v616_v62 = vadd.f32 %v2717_v34, %v615_v58 }
  0xd0   : > { %v705_v63 = vadd.f32 %v704_v56, %v616_v62 }
  0xd2   : > { %v707_v1 = vpop.f32.mrf.mxu1  ;;  %v780_v5 = vmax.f32 %v705_v63, 0.0 }
  0xd4   : > { %v810_v6 = vpack.c.bf16 %v780_v5, %v779_v4  ;;  %v2755_v4 = vpop.f32.mrf.mxu3 }
  0xd5   : > { %2024 = vmatmul.msk.bf16.gmra.mxu1 %vm546_vm1, %v1921_v0  ;;  %v618_v8 = vpop.f32.mrf.mxu0 }
  0xd6   : > { %906 = vmatmul.bf16.gmra.mxu2 %v810_v6  ;;  %v619_v10 = vadd.f32 %v2717_v34, %v618_v8 }
  0xd8   : > { %657 = vmatmul.bf16.gmra.mxu0 %v1917_v7  ;;  %v708_v14 = vadd.f32 %v707_v1, %v619_v10 }
  0xda   : > { %v709_v9 = vpop.f32.mrf.mxu1  ;;  %v781_v21 = vmax.f32 %v708_v14, 0.0 }
  0xdc   : > { %v2757_v12 = vpop.f32.mrf.mxu3 }
  0xdd   : > { %v620_v11 = vpop.f32.mrf.mxu0 }
  0xde   : > { %v621_v15 = vadd.f32 %v2717_v34, %v620_v11 }
  0xe0   : > { %v710_v16 = vadd.f32 %v709_v9, %v621_v15 }
  0xe2   : > { %v712_v18 = vpop.f32.mrf.mxu1  ;;  %v782_v22 = vmax.f32 %v710_v16, 0.0 }
  0xe4   : > { %v811_v23 = vpack.c.bf16 %v782_v22, %v781_v21  ;;  %v2761_v21 = vpop.f32.mrf.mxu3 }
  0xe5   : > { %2025 = vmatmul.msk.bf16.gmra.mxu1 %vm546_vm1, %v1929_v17  ;;  %v623_v25 = vpop.f32.mrf.mxu0 }
  0xe6   : > { %911 = vmatmul.bf16.gmra.mxu2 %v811_v23  ;;  %v624_v27 = vadd.f32 %v2717_v34, %v623_v25 }
  0xe8   : > { %662 = vmatmul.bf16.gmra.mxu0 %v1925_v24  ;;  %v713_v31 = vadd.f32 %v712_v18, %v624_v27 }
  0xea   : > { %v714_v26 = vpop.f32.mrf.mxu1  ;;  %v783_v37 = vmax.f32 %v713_v31, 0.0 }
  0xec   : > { %v2764_v27 = vpop.f32.mrf.mxu3 }
  0xed   : > { %v625_v28 = vpop.f32.mrf.mxu0 }
  0xee   : > { %v626_v32 = vadd.f32 %v2717_v34, %v625_v28 }
  0xf0   : > { %v715_v33 = vadd.f32 %v714_v26, %v626_v32 }
  0xf2   : > { %v717_v36 = vpop.f32.mrf.mxu1  ;;  %v784_v38 = vmax.f32 %v715_v33, 0.0 }
  0xf4   : > { %v812_v39 = vpack.c.bf16 %v784_v38, %v783_v37  ;;  %v2770_v37 = vld [vmem:[%s3195_s4] ss:$0 sm:$0xff]  ;;  %v2772_v38 = vpop.f32.mrf.mxu3 }
  0xf5   : > { %2026 = vmatmul.msk.bf16.gmra.mxu1 %vm546_vm1, %v1937_v35  ;;  %v628_v40 = vpop.f32.mrf.mxu0 }
  0xf6   : > { %916 = vmatmul.bf16.gmra.mxu2 %v812_v39  ;;  %v629_v42 = vadd.f32 %v2717_v34, %v628_v40 }
  0xf8   : > { %v718_v44 = vadd.f32 %v717_v36, %v629_v42 }
  0xfa   : > { %v719_v41 = vpop.f32.mrf.mxu1  ;;  %v785_v48 = vmax.f32 %v718_v44, 0.0 }
  0xfd   : > { %v630_v43 = vpop.f32.mrf.mxu0 }
  0xfe   : > { %v631_v45 = vadd.f32 %v2717_v34, %v630_v43 }
 0x100   : > { %v720_v46 = vadd.f32 %v719_v41, %v631_v45 }
 0x102   : > { %v722_v47 = vpop.f32.mrf.mxu1  ;;  %v786_v49 = vmax.f32 %v720_v46, 0.0 }
 0x104   : > { %v813_v50 = vpack.c.bf16 %v786_v49, %v785_v48 }
 0x105   : > { %v633_v51 = vpop.f32.mrf.mxu0 }
 0x106   : > { %921 = vmatmul.bf16.gmra.mxu2 %v813_v50  ;;  %v634_v53 = vadd.f32 %v2717_v34, %v633_v51  ;;  %v2780_v50 = vpop.f32.mrf.mxu3 }
 0x108   : > { %v723_v55 = vadd.f32 %v722_v47, %v634_v53 }
 0x10a   : > { %v724_v52 = vpop.f32.mrf.mxu1  ;;  %v787_v59 = vmax.f32 %v723_v55, 0.0 }
 0x10d   : > { %v635_v54 = vpop.f32.mrf.mxu0 }
 0x10e   : > { %v636_v56 = vadd.f32 %v2717_v34, %v635_v54 }
 0x110   : > { %v725_v57 = vadd.f32 %v724_v52, %v636_v56 }
 0x112   : > { %v727_v58 = vpop.f32.mrf.mxu1  ;;  %v788_v60 = vmax.f32 %v725_v57, 0.0 }
 0x114   : > { %v814_v61 = vpack.c.bf16 %v788_v60, %v787_v59 }
 0x115   : > { %v638_v62 = vpop.f32.mrf.mxu0 }
 0x116   : > { %926 = vmatmul.bf16.gmra.mxu2 %v814_v61  ;;  %v639_v0 = vadd.f32 %v2717_v34, %v638_v62 }
 0x118   : > { %v728_v2 = vadd.f32 %v727_v58, %v639_v0  ;;  %v2790_v0 = vpop.f32.mrf.mxu3 }
 0x11a   : > { %v729_v63 = vpop.f32.mrf.mxu1  ;;  %v789_v7 = vmax.f32 %v728_v2, 0.0 }
 0x11d   : > { %v640_v1 = vpop.f32.mrf.mxu0 }
 0x11e   : > { %v641_v3 = vadd.f32 %v2717_v34, %v640_v1 }
 0x120   : > { %v730_v5 = vadd.f32 %v729_v63, %v641_v3 }
 0x122   : > { %v732_v6 = vpop.f32.mrf.mxu1  ;;  %v790_v8 = vmax.f32 %v730_v5, 0.0 }
 0x124   : > { %v815_v9 = vpack.c.bf16 %v790_v8, %v789_v7 }
 0x125   : > { %v643_v10 = vpop.f32.mrf.mxu0 }
 0x126   : > { %931 = vmatmul.bf16.gmra.mxu2 %v815_v9  ;;  %v644_v13 = vadd.f32 %v2717_v34, %v643_v10 }
 0x128   : > { %v733_v15 = vadd.f32 %v732_v6, %v644_v13 }
 0x12a   : > { %v734_v11 = vpop.f32.mrf.mxu1  ;;  %v791_v19 = vmax.f32 %v733_v15, 0.0 }
 0x12d   : > { %v645_v14 = vpop.f32.mrf.mxu0 }
 0x12e   : > { %v646_v16 = vadd.f32 %v2717_v34, %v645_v14 }
 0x130   : > { %v735_v17 = vadd.f32 %v734_v11, %v646_v16  ;;  %v982_v11 = vlaneseq }
 0x132   : > { %v737_v18 = vpop.f32.mrf.mxu1  ;;  %v792_v20 = vmax.f32 %v735_v17, 0.0 }
 0x134   : > { %v816_v22 = vpack.c.bf16 %v792_v20, %v791_v19 }
 0x135   : > { %v648_v23 = vpop.f32.mrf.mxu0 }
 0x136   : > { %936 = vmatmul.bf16.gmra.mxu2 %v816_v22  ;;  %v649_v25 = vadd.f32 %v2717_v34, %v648_v23 }
 0x138   : > { %v738_v28 = vadd.f32 %v737_v18, %v649_v25 }
 0x13a   : > { %v739_v24 = vpop.f32.mrf.mxu1  ;;  %v793_v32 = vmax.f32 %v738_v28, 0.0  ;;  %v2802_v28 = vand.u32 127, %v982_v11 }
 0x13c   : > { %vm1656_vm6 = vcmp.lt.s32.totalorder %v2802_v28, 3 }
 0x13d   : > { %v650_v26 = vpop.f32.mrf.mxu0 }
 0x13e   : > { %v651_v29 = vadd.f32 %v2717_v34, %v650_v26 }
 0x140   : > { %v740_v30 = vadd.f32 %v739_v24, %v651_v29 }
 0x142   : > { %v742_v31 = vpop.f32.mrf.mxu1  ;;  %v794_v33 = vmax.f32 %v740_v30, 0.0 }
 0x144   : > { %v817_v35 = vpack.c.bf16 %v794_v33, %v793_v32  ;;  %v2806_v32 = vpop.f32.mrf.mxu3 }
 0x145   : > { %v653_v36 = vpop.f32.mrf.mxu0 }
 0x146   : > { %941 = vmatmul.bf16.gmra.mxu2 %v817_v35  ;;  %v654_v41 = vadd.f32 %v2717_v34, %v653_v36 }
 0x148   : > { %v743_v45 = vadd.f32 %v742_v31, %v654_v41 }
 0x149   : > { %v902_v40 = vpop.f32.mrf.mxu2 }
 0x14a   : > { %v744_v39 = vpop.f32.mrf.mxu1  ;;  %v2776_v42 = vadd.f32 %v2770_v37, %v902_v40  ;;  %v795_v51 = vmax.f32 %v743_v45, 0.0 }
 0x14c   : > { %v2062_v43 = vmul.f32 -1.442695, %v2776_v42 }
 0x14d   : > { %v655_v44 = vpop.f32.mrf.mxu0 }
 0x14e   : > { %2250 = vpow2.f32 %v2062_v43  ;;  %v656_v46 = vadd.f32 %v2717_v34, %v655_v44 }
 0x150   : > { %v745_v47 = vadd.f32 %v744_v39, %v656_v46 }
 0x151   : > { %v904_v49 = vpop.f32.mrf.mxu2 }
 0x152   : > { %v747_v48 = vpop.f32.mrf.mxu1  ;;  %v796_v52 = vmax.f32 %v745_v47, 0.0  ;;  %v2783_v53 = vadd.f32 %v2770_v37, %v904_v49 }
 0x154   : > { %v2251_v54 = vpop.eup %2250  ;;  %v2063_v55 = vmul.f32 -1.442695, %v2783_v53  ;;  %v818_v56 = vpack.c.bf16 %v796_v52, %v795_v51 }
 0x155   : > { %v1080_v57 = vadd.f32 1.0, %v2251_v54  ;;  %v658_v58 = vpop.f32.mrf.mxu0 }
 0x156   : > { %2252 = vpow2.f32 %v2063_v55  ;;  %946 = vmatmul.bf16.gmra.mxu2 %v818_v56  ;;  %v659_v59 = vadd.f32 %v2717_v34, %v658_v58 }
 0x157   : > { %2254 = vrcp.f32 %v1080_v57  ;;  %v1121_v13 = vand.u32 2147483647, %v1080_v57  ;;  %v1123_v14 = vand.u32 2147483648, %v1080_v57  ;;  %vm1117_vm3 = vweird.f32 %v1080_v57 }
 0x158   : > { %v748_v5 = vadd.f32 %v747_v48, %v659_v59 }
 0x159   : > { %v907_v61 = vpop.f32.mrf.mxu2  ;;  %v1124_v29 = vor.u32 1.1754944e-38, %v1123_v14  ;;  %vm1122_vm5 = vcmp.eq.f32.partialorder %v1121_v13, 8.507059e+37 }
 0x15a   : > { %v749_v60 = vpop.f32.mrf.mxu1  ;;  %v2788_v62 = vadd.f32 %v2770_v37, %v907_v61  ;;  %v797_v15 = vmax.f32 %v748_v5, 0.0 }
 0x15c   : > { %v2253_v63 = vpop.eup %2252  ;;  %v2064_v1 = vmul.f32 -1.442695, %v2788_v62 }
 0x15d   : > { %v2255_v2 = vpop.eup %2254  ;;  %v2793_v3 = vadd.f32 1.0, %v2253_v63  ;;  %v660_v6 = vpop.f32.mrf.mxu0 }
 0x15e   : > { %v1113_v7 = vmul.f32 %v2255_v2, %v1080_v57  ;;  %2256 = vpow2.f32 %v2064_v1  ;;  %v661_v8 = vadd.f32 %v2717_v34, %v660_v6  ;;  %vm1118_vm2 = vweird.f32 %v2255_v2 }
 0x15f   : > { %2258 = vrcp.f32 %v2793_v3  ;;  %vm1119_vm4 = vmor %vm1117_vm3, %vm1118_vm2  ;;  %v1138_v41 = vand.u32 2147483648, %v2793_v3  ;;  %v1136_v47 = vand.u32 2147483647, %v2793_v3  ;;  %vm1132_vm8 = vweird.f32 %v2793_v3 }
 0x160   : > { %v1114_v9 = vsub.f32 1.0, %v1113_v7  ;;  %v750_v10 = vadd.f32 %v749_v60, %v661_v8 }
 0x161   : > { %v909_v17 = vpop.f32.mrf.mxu2  ;;  %v1139_v56 = vor.u32 1.1754944e-38, %v1138_v41  ;;  %vm1137_vm10 = vcmp.eq.f32.partialorder %v1136_v47, 8.507059e+37 }
 0x162   : > { %v752_v16 = vpop.f32.mrf.mxu1  ;;  %v1115_v18 = vmul.f32 %v2255_v2, %v1114_v9  ;;  %v798_v19 = vmax.f32 %v750_v10, 0.0  ;;  %v2798_v20 = vadd.f32 %v2770_v37, %v909_v17 }
 0x164   : > { %v2257_v22 = vpop.eup %2256  ;;  %v1116_v23 = vadd.f32 %v2255_v2, %v1115_v18  ;;  %v2065_v24 = vmul.f32 -1.442695, %v2798_v20  ;;  %v819_v25 = vpack.c.bf16 %v798_v19, %v797_v15 }
 0x165   : > { %v2259_v26 = vpop.eup %2258  ;;  %v2804_v30 = vadd.f32 1.0, %v2257_v22  ;;  %v663_v31 = vpop.f32.mrf.mxu0  ;;  %v669_v22 = vadd.f32 %v2717_v34, %v2755_v4  ;;  %v671_v4 = vadd.f32 %v2717_v34, %v2757_v12 }
 0x166   : > { %v1120_v33 = vsel %vm1119_vm4, %v2255_v2, %v1116_v23  ;;  %v1128_v35 = vmul.f32 %v2259_v26, %v2793_v3  ;;  %2260 = vpow2.f32 %v2065_v24  ;;  %951 = vmatmul.bf16.gmra.mxu2 %v819_v25  ;;  %vm1133_vm7 = vweird.f32 %v2259_v26  ;;  %v2832_v2 = vpop.f32.mrf.mxu3 }
 0x167   : > { %v1125_v36 = vsel %vm1122_vm5, %v1124_v29, %v1120_v33  ;;  %2262 = vrcp.f32 %v2804_v30  ;;  %v664_v48 = vadd.f32 %v2717_v34, %v663_v31  ;;  %vm1134_vm9 = vmor %vm1132_vm8, %vm1133_vm7  ;;  %v1153_v6 = vand.u32 2147483648, %v2804_v30 }
 0x168   : > { %v1592_v39 = vmax.f32 %v1125_v36, 0.0001  ;;  %v1129_v40 = vsub.f32 1.0, %v1128_v35  ;;  %v1151_v13 = vand.u32 2147483647, %v2804_v30  ;;  %vm1147_vm12 = vweird.f32 %v2804_v30 }
 0x169   : > { %v912_v44 = vpop.f32.mrf.mxu2  ;;  %v753_v1 = vadd.f32 %v752_v16, %v664_v48  ;;  %v1154_v23 = vor.u32 1.1754944e-38, %v1153_v6 }
 0x16a   : > { %v754_v43 = vpop.f32.mrf.mxu1  ;;  %v1624_v45 = vmin.f32 %v1592_v39, 0.9999  ;;  %v1130_v46 = vmul.f32 %v2259_v26, %v1129_v40  ;;  %v2817_v49 = vadd.f32 %v2770_v37, %v912_v44  ;;  %vm1152_vm14 = vcmp.eq.f32.partialorder %v1151_v13, 8.507059e+37 }
 0x16b   : > { %v799_v14 = vmax.f32 %v753_v1, 0.0  ;;  %v674_v1 = vadd.f32 %v2717_v34, %v2761_v21 }
 0x16c   : > { %v2261_v51 = vpop.eup %2260  ;;  %v1657_v52 = vsel %vm1656_vm6, %v1624_v45, %v2776_v42  ;;  %v1131_v54 = vadd.f32 %v2259_v26, %v1130_v46  ;;  %v2066_v58 = vmul.f32 -1.442695, %v2817_v49 }
 0x16d   : > { %v2263_v55 = vpop.eup %2262  ;;  %1689 = vst [vmem:[%s2823_s8] sm:$0xff] %v1657_v52  ;;  %v2826_v57 = vadd.f32 1.0, %v2261_v51  ;;  %v665_v59 = vpop.f32.mrf.mxu0 }
 0x16e   : > { %v1135_v60 = vsel %vm1134_vm9, %v2259_v26, %v1131_v54  ;;  %v1143_v61 = vmul.f32 %v2263_v55, %v2804_v30  ;;  %v666_v42 = vadd.f32 %v2717_v34, %v665_v59  ;;  %vm1148_vm11 = vweird.f32 %v2263_v55  ;;  %v764_v44 = vpop.f32.mrf.mxu3 }
 0x16f   : > { %v1140_v63 = vsel %vm1137_vm10, %v1139_v56, %v1135_v60  ;;  %2264 = vrcp.f32 %v2826_v57  ;;  %vm1149_vm13 = vmor %vm1147_vm12, %vm1148_vm11  ;;  %v1166_v39 = vand.u32 2147483647, %v2826_v57  ;;  %v1168_v40 = vand.u32 2147483648, %v2826_v57 }
 0x170   : > { %v1593_v3 = vmax.f32 %v1140_v63, 0.0001  ;;  %v1144_v5 = vsub.f32 1.0, %v1143_v61  ;;  %2266 = vpow2.f32 %v2066_v58  ;;  %v755_v7 = vadd.f32 %v754_v43, %v666_v42 }
 0x171   : > { %v914_v9 = vpop.f32.mrf.mxu2  ;;  %vm1162_vm0 = vweird.f32 %v2826_v57  ;;  %vm1167_vm2 = vcmp.eq.f32.partialorder %v1166_v39, 8.507059e+37  ;;  %v1169_v58 = vor.u32 1.1754944e-38, %v1168_v40 }
 0x172   : > { %v757_v8 = vpop.f32.mrf.mxu1  ;;  %v1625_v10 = vmin.f32 %v1593_v3, 0.9999  ;;  %v1145_v11 = vmul.f32 %v2263_v55, %v1144_v5  ;;  %v800_v15 = vmax.f32 %v755_v7, 0.0  ;;  %v2837_v16 = vadd.f32 %v2770_v37, %v914_v9 }
 0x173   : > { %v758_v35 = vadd.f32 %v757_v8, %v669_v22  ;;  %v676_v3 = vadd.f32 %v2717_v34, %v2764_v27 }
 0x174   : > { %v1658_v17 = vsel %vm1656_vm6, %v1625_v10, %v2783_v53  ;;  %v1146_v18 = vadd.f32 %v2263_v55, %v1145_v11  ;;  %v2067_v24 = vmul.f32 -1.442695, %v2837_v16  ;;  %v820_v25 = vpack.c.bf16 %v800_v15, %v799_v14 }
 0x175   : > { %v2265_v19 = vpop.eup %2264  ;;  %1690 = vst [vmem:[%s2823_s8 + $0x8] sm:$0xff] %v1658_v17  ;;  %v801_v12 = vmax.f32 %v758_v35, 0.0  ;;  %v763_v15 = vadd.f32 %v2832_v2, %v674_v1  ;;  %v765_v17 = vadd.f32 %v764_v44, %v676_v3 }
 0x176   : > { %v2267_v26 = vpop.eup %2266  ;;  %v1150_v29 = vsel %vm1149_vm13, %v2263_v55, %v1146_v18  ;;  %v1158_v31 = vmul.f32 %v2265_v19, %v2826_v57  ;;  %2268 = vpow2.f32 %v2067_v24  ;;  %956 = vmatmul.bf16.gmra.mxu2 %v820_v25  ;;  %vm1163_vm15 = vweird.f32 %v2265_v19  ;;  %v767_v13 = vpop.f32.mrf.mxu3 }
 0x177   : > { %v1155_v33 = vsel %vm1152_vm14, %v1154_v23, %v1150_v29  ;;  %v2848_v53 = vadd.f32 1.0, %v2267_v26  ;;  %vm1164_vm1 = vmor %vm1162_vm0, %vm1163_vm15  ;;  %v803_v25 = vmax.f32 %v763_v15, 0.0  ;;  %v804_v26 = vmax.f32 %v765_v17, 0.0 }
 0x178   : > { %v1594_v30 = vmax.f32 %v1155_v33, 0.0001  ;;  %v1159_v36 = vsub.f32 1.0, %v1158_v31 }
 0x179   : > { %2270 = vrcp.f32 %v2848_v53  ;;  %v917_v43 = vpop.f32.mrf.mxu2  ;;  %v1181_v9 = vand.u32 2147483647, %v2848_v53  ;;  %v1183_v10 = vand.u32 2147483648, %v2848_v53  ;;  %vm1177_vm4 = vweird.f32 %v2848_v53 }
 0x17a   : > { %v759_v41 = vpop.f32.mrf.mxu1  ;;  %v1626_v45 = vmin.f32 %v1594_v30, 0.9999  ;;  %v1160_v46 = vmul.f32 %v2265_v19, %v1159_v36  ;;  %v2856_v48 = vadd.f32 %v2770_v37, %v917_v43 }
 0x17b   : > { %v760_v47 = vadd.f32 %v759_v41, %v671_v4  ;;  %v1184_v23 = vor.u32 1.1754944e-38, %v1183_v10  ;;  %vm1182_vm7 = vcmp.eq.f32.partialorder %v1181_v9, 8.507059e+37 }
 0x17c   : > { %v1659_v51 = vsel %vm1656_vm6, %v1626_v45, %v2788_v62  ;;  %v1161_v52 = vadd.f32 %v2265_v19, %v1160_v46  ;;  %v2068_v55 = vmul.f32 -1.442695, %v2856_v48  ;;  %v2269_v56 = vpop.eup %2268  ;;  %v822_v45 = vpack.c.bf16 %v804_v26, %v803_v25 }
 0x17d   : > { %v802_v54 = vmax.f32 %v760_v47, 0.0  ;;  %1691 = vst [vmem:[%s2823_s8 + $0x10] sm:$0xff] %v1659_v51  ;;  %v2865_v60 = vadd.f32 1.0, %v2269_v56 }
 0x17e   : > { %v1165_v59 = vsel %vm1164_vm1, %v2265_v19, %v1161_v52  ;;  %2272 = vpow2.f32 %v2068_v55  ;;  %v769_v46 = vpop.f32.mrf.mxu3 }
 0x17f   : > { %v821_v61 = vpack.c.bf16 %v802_v54, %v801_v12  ;;  %v2271_v57 = vpop.eup %2270  ;;  %v1170_v42 = vsel %vm1167_vm2, %v1169_v58, %v1165_v59  ;;  %2274 = vrcp.f32 %v2865_v60  ;;  %v1198_v35 = vand.u32 2147483648, %v2865_v60 }
 0x180   : > { %v1595_v63 = vmax.f32 %v1170_v42, 0.0001  ;;  %v1173_v62 = vmul.f32 %v2271_v57, %v2848_v53  ;;  %vm1178_vm3 = vweird.f32 %v2271_v57  ;;  %v1196_v30 = vand.u32 2147483647, %v2865_v60 }
 0x181   : > { %961 = vmatmul.bf16.vlgmr.msra.gmra.mxu3 %v821_v61  ;;  %v919_v5 = vpop.f32.mrf.mxu2  ;;  %vm1179_vm5 = vmor %vm1177_vm4, %vm1178_vm3  ;;  %vm1192_vm9 = vweird.f32 %v2865_v60  ;;  %v1199_v12 = vor.u32 1.1754944e-38, %v1198_v35  ;;  %v679_v54 = vadd.f32 %v2717_v34, %v2772_v38  ;;  %v681_v58 = vadd.f32 %v2717_v34, %v2780_v50 }
 0x182   : > { %v1627_v6 = vmin.f32 %v1595_v63, 0.9999  ;;  %v1174_v7 = vsub.f32 1.0, %v1173_v62  ;;  %v2874_v8 = vadd.f32 %v2770_v37, %v919_v5  ;;  %vm1197_vm11 = vcmp.eq.f32.partialorder %v1196_v30, 8.507059e+37 }
 0x183   : > { %v768_v62 = vadd.f32 %v767_v13, %v679_v54  ;;  %v770_v5 = vadd.f32 %v769_v46, %v681_v58 }
 0x184   : > { %v2273_v11 = vpop.eup %2272  ;;  %v1660_v21 = vsel %vm1656_vm6, %v1627_v6, %v2798_v20  ;;  %v1175_v14 = vmul.f32 %v2271_v57, %v1174_v7  ;;  %v2069_v27 = vmul.f32 -1.442695, %v2874_v8 }
 0x185   : > { %1692 = vst [vmem:[%s2823_s8 + $0x18] sm:$0xff] %v1660_v21  ;;  %v2884_v18 = vadd.f32 1.0, %v2273_v11  ;;  %v2275_v19 = vpop.eup %2274  ;;  %v805_v15 = vmax.f32 %v768_v62, 0.0  ;;  %v806_v17 = vmax.f32 %v770_v5, 0.0 }
 0x186   : > { %v1176_v22 = vadd.f32 %v2271_v57, %v1175_v14  ;;  %2276 = vpow2.f32 %v2069_v27  ;;  %v1188_v24 = vmul.f32 %v2275_v19, %v2865_v60  ;;  %vm1193_vm8 = vweird.f32 %v2275_v19  ;;  %v772_v21 = vpop.f32.mrf.mxu3 }
 0x187   : > { %2278 = vrcp.f32 %v2884_v18  ;;  %vm1194_vm10 = vmor %vm1192_vm9, %vm1193_vm8  ;;  %v1213_v59 = vand.u32 2147483648, %v2884_v18  ;;  %vm1207_vm13 = vweird.f32 %v2884_v18  ;;  %v823_v35 = vpack.c.bf16 %v806_v17, %v805_v15 }
 0x188   : > { %v1180_v20 = vsel %vm1179_vm5, %v2271_v57, %v1176_v22  ;;  %v1189_v29 = vsub.f32 1.0, %v1188_v24  ;;  %v1211_v57 = vand.u32 2147483647, %v2884_v18 }
 0x189   : > { %v1185_v2 = vsel %vm1182_vm7, %v1184_v23, %v1180_v20  ;;  %v922_v31 = vpop.f32.mrf.mxu2  ;;  %v1214_v7 = vor.u32 1.1754944e-38, %v1213_v59 }
 0x18a   : > { %v1596_v33 = vmax.f32 %v1185_v2, 0.0001  ;;  %v2891_v4 = vadd.f32 %v2770_v37, %v922_v31  ;;  %v1190_v53 = vmul.f32 %v2275_v19, %v1189_v29  ;;  %vm1212_vm15 = vcmp.eq.f32.partialorder %v1211_v57, 8.507059e+37 }
 0x18c   : > { %v2277_v36 = vpop.eup %2276  ;;  %v1628_v39 = vmin.f32 %v1596_v33, 0.9999  ;;  %v2070_v40 = vmul.f32 -1.442695, %v2891_v4  ;;  %v1191_v43 = vadd.f32 %v2275_v19, %v1190_v53 }
 0x18d   : > { %v2279_v41 = vpop.eup %2278  ;;  %v2896_v44 = vadd.f32 1.0, %v2277_v36 }
 0x18e   : > { %v1661_v47 = vsel %vm1656_vm6, %v1628_v39, %v2817_v49  ;;  %v1203_v51 = vmul.f32 %v2279_v41, %v2884_v18  ;;  %2280 = vpow2.f32 %v2070_v40  ;;  %v1195_v52 = vsel %vm1194_vm10, %v2275_v19, %v1191_v43  ;;  %v774_v46 = vpop.f32.mrf.mxu3 }
 0x18f   : > { %1693 = vst [vmem:[%s2823_s8 + $0x20] sm:$0xff] %v1661_v47  ;;  %2282 = vrcp.f32 %v2896_v44  ;;  %v1200_v55 = vsel %vm1197_vm11, %v1199_v12, %v1195_v52  ;;  %vm1208_vm12 = vweird.f32 %v2279_v41  ;;  %v1228_v18 = vand.u32 2147483648, %v2896_v44 }
 0x190   : > { %v1204_v56 = vsub.f32 1.0, %v1203_v51  ;;  %v1597_v49 = vmax.f32 %v1200_v55, 0.0001  ;;  %vm1209_vm14 = vmor %vm1207_vm13, %vm1208_vm12  ;;  %vm1222_vm1 = vweird.f32 %v2896_v44  ;;  %v684_v40 = vadd.f32 %v2717_v34, %v2790_v0 }
 0x191   : > { %966 = vmatmul.bf16.gmra.mxu3 %v822_v45  ;;  %v924_v60 = vpop.f32.mrf.mxu2  ;;  %v1229_v31 = vor.u32 1.1754944e-38, %v1228_v18 }
 0x192   : > { %v1205_v61 = vmul.f32 %v2279_v41, %v1204_v56  ;;  %v2911_v42 = vadd.f32 %v2770_v37, %v924_v60  ;;  %v1629_v63 = vmin.f32 %v1597_v49, 0.9999  ;;  %v773_v55 = vadd.f32 %v772_v21, %v684_v40 }
 0x194   : > { %v2281_v38 = vpop.eup %2280  ;;  %v1206_v1 = vadd.f32 %v2279_v41, %v1205_v61  ;;  %v2071_v50 = vmul.f32 -1.442695, %v2911_v42  ;;  %v1662_v6 = vsel %vm1656_vm6, %v1629_v63, %v2837_v16  ;;  %v1226_v16 = vand.u32 2147483647, %v2896_v44 }
 0x195   : > { %v2283_v3 = vpop.eup %2282  ;;  %v2918_v9 = vadd.f32 1.0, %v2281_v38  ;;  %1694 = vst [vmem:[%s2823_s8 + $0x28] sm:$0xff] %v1662_v6  ;;  %v807_v63 = vmax.f32 %v773_v55, 0.0 }
 0x196   : > { %v1210_v10 = vsel %vm1209_vm14, %v2279_v41, %v1206_v1  ;;  %v1218_v11 = vmul.f32 %v2283_v3, %v2896_v44  ;;  %2284 = vpow2.f32 %v2071_v50  ;;  %vm1223_vm0 = vweird.f32 %v2283_v3 }
 0x197   : > { %v1215_v13 = vsel %vm1212_vm15, %v1214_v7, %v1210_v10  ;;  %2286 = vrcp.f32 %v2918_v9  ;;  %vm1224_vm2 = vmor %vm1222_vm1, %vm1223_vm0  ;;  %vm1227_vm3 = vcmp.eq.f32.partialorder %v1226_v16, 8.507059e+37  ;;  %v686_v41 = vadd.f32 %v2717_v34, %v2806_v32 }
 0x198   : > { %v1598_v14 = vmax.f32 %v1215_v13, 0.0001  ;;  %v1219_v27 = vsub.f32 1.0, %v1218_v11  ;;  %v1241_v43 = vand.u32 2147483647, %v2918_v9  ;;  %v1243_v44 = vand.u32 2147483648, %v2918_v9 }
 0x199   : > { %v927_v19 = vpop.f32.mrf.mxu2  ;;  %vm1237_vm5 = vweird.f32 %v2918_v9  ;;  %v775_v56 = vadd.f32 %v774_v46, %v686_v41 }
 0x19a   : > { %v1630_v22 = vmin.f32 %v1598_v14, 0.9999  ;;  %v1220_v23 = vmul.f32 %v2283_v3, %v1219_v27  ;;  %v2926_v24 = vadd.f32 %v2770_v37, %v927_v19  ;;  %v1244_v58 = vor.u32 1.1754944e-38, %v1243_v44 }
 0x19b   : > { %vm1242_vm8 = vcmp.eq.f32.partialorder %v1241_v43, 8.507059e+37  ;;  %v808_v38 = vmax.f32 %v775_v56, 0.0 }
 0x19c   : > { %v2285_v20 = vpop.eup %2284  ;;  %v1663_v25 = vsel %vm1656_vm6, %v1630_v22, %v2856_v48  ;;  %v1221_v26 = vadd.f32 %v2283_v3, %v1220_v23  ;;  %v2072_v2 = vmul.f32 -1.442695, %v2926_v24 }
 0x19d   : > { %v2287_v29 = vpop.eup %2286  ;;  %1695 = vst [vmem:[%s2823_s8 + $0x30] sm:$0xff] %v1663_v25  ;;  %v2934_v33 = vadd.f32 1.0, %v2285_v20  ;;  %v824_v27 = vpack.c.bf16 %v808_v38, %v807_v63 }
 0x19e   : > { %v1225_v53 = vsel %vm1224_vm2, %v2283_v3, %v1221_v26  ;;  %v1233_v30 = vmul.f32 %v2287_v29, %v2918_v9  ;;  %2288 = vpow2.f32 %v2072_v2  ;;  %vm1238_vm4 = vweird.f32 %v2287_v29 }
 0x19f   : > { %v1230_v36 = vsel %vm1227_vm3, %v1229_v31, %v1225_v53  ;;  %2290 = vrcp.f32 %v2934_v33  ;;  %vm1239_vm7 = vmor %vm1237_vm5, %vm1238_vm4  ;;  %v1256_v62 = vand.u32 2147483647, %v2934_v33  ;;  %v1258_v1 = vand.u32 2147483648, %v2934_v33 }
 0x1a0   : > { %v1599_v48 = vmax.f32 %v1230_v36, 0.0001  ;;  %v1234_v39 = vsub.f32 1.0, %v1233_v30  ;;  %vm1252_vm10 = vweird.f32 %v2934_v33 }
 0x1a1   : > { %971 = vmatmul.bf16.gmra.mxu3 %v823_v35  ;;  %v929_v45 = vpop.f32.mrf.mxu2  ;;  %v1259_v21 = vor.u32 1.1754944e-38, %v1258_v1  ;;  %vm1257_vm12 = vcmp.eq.f32.partialorder %v1256_v62, 8.507059e+37 }
 0x1a2   : > { %v1631_v47 = vmin.f32 %v1599_v48, 0.9999  ;;  %v1235_v12 = vmul.f32 %v2287_v29, %v1234_v39  ;;  %v2945_v51 = vadd.f32 %v2770_v37, %v929_v45 }
 0x1a4   : > { %v2289_v52 = vpop.eup %2288  ;;  %v1664_v0 = vsel %vm1656_vm6, %v1631_v47, %v2874_v8  ;;  %v1236_v54 = vadd.f32 %v2287_v29, %v1235_v12  ;;  %v2073_v34 = vmul.f32 -1.442695, %v2945_v51 }
 0x1a5   : > { %v2291_v32 = vpop.eup %2290  ;;  %1696 = vst [vmem:[%s2823_s8 + $0x38] sm:$0xff] %v1664_v0  ;;  %v1090_v49 = vadd.f32 1.0, %v2289_v52 }
 0x1a6   : > { %v1240_v59 = vsel %vm1239_vm7, %v2287_v29, %v1236_v54  ;;  %v1248_v60 = vmul.f32 %v2291_v32, %v2934_v33  ;;  %2292 = vpow2.f32 %v2073_v34  ;;  %vm1253_vm9 = vweird.f32 %v2291_v32 }
 0x1a7   : > { %v1245_v61 = vsel %vm1242_vm8, %v1244_v58, %v1240_v59  ;;  %2294 = vrcp.f32 %v1090_v49  ;;  %vm1254_vm11 = vmor %vm1252_vm10, %vm1253_vm9  ;;  %v1271_v19 = vand.u32 2147483647, %v1090_v49  ;;  %v1273_v22 = vand.u32 2147483648, %v1090_v49 }
 0x1a8   : > { %v1600_v8 = vmax.f32 %v1245_v61, 0.0001  ;;  %v1249_v57 = vsub.f32 1.0, %v1248_v60  ;;  %vm1267_vm14 = vweird.f32 %v1090_v49 }
 0x1a9   : > { %v932_v50 = vpop.f32.mrf.mxu2  ;;  %v1274_v53 = vor.u32 1.1754944e-38, %v1273_v22  ;;  %vm1272_vm0 = vcmp.eq.f32.partialorder %v1271_v19, 8.507059e+37 }
 0x1aa   : > { %v1632_v3 = vmin.f32 %v1600_v8, 0.9999  ;;  %v1250_v5 = vmul.f32 %v2291_v32, %v1249_v57  ;;  %v2957_v6 = vadd.f32 %v2770_v37, %v932_v50 }
 0x1ac   : > { %v2293_v7 = vpop.eup %2292  ;;  %v1665_v9 = vsel %vm1656_vm6, %v1632_v3, %v2891_v4  ;;  %v1251_v10 = vadd.f32 %v2291_v32, %v1250_v5  ;;  %v2074_v11 = vmul.f32 -1.442695, %v2957_v6 }
 0x1ad   : > { %v2295_v13 = vpop.eup %2294  ;;  %1697 = vst [vmem:[%s2823_s8 + $0x40] sm:$0xff] %v1665_v9  ;;  %v1091_v14 = vadd.f32 1.0, %v2293_v7 }
 0x1ae   : > { %v1255_v15 = vsel %vm1254_vm11, %v2291_v32, %v1251_v10  ;;  %v1263_v17 = vmul.f32 %v2295_v13, %v1090_v49  ;;  %2296 = vpow2.f32 %v2074_v11  ;;  %vm1268_vm13 = vweird.f32 %v2295_v13 }
 0x1af   : > { %v1260_v16 = vsel %vm1257_vm12, %v1259_v21, %v1255_v15  ;;  %2298 = vrcp.f32 %v1091_v14  ;;  %vm1269_vm15 = vmor %vm1267_vm14, %vm1268_vm13  ;;  %v1286_v43 = vand.u32 2147483647, %v1091_v14  ;;  %vm1282_vm2 = vweird.f32 %v1091_v14 }
 0x1b0   : > { %v1601_v18 = vmax.f32 %v1260_v16, 0.0001  ;;  %v1264_v4 = vsub.f32 1.0, %v1263_v17 }
 0x1b1   : > { %976 = vmatmul.bf16.gmra.mxu3 %v824_v27  ;;  %v934_v23 = vpop.f32.mrf.mxu2  ;;  %vm1287_vm4 = vcmp.eq.f32.partialorder %v1286_v43, 8.507059e+37 }
 0x1b2   : > { %v1633_v20 = vmin.f32 %v1601_v18, 0.9999  ;;  %v1265_v25 = vmul.f32 %v2295_v13, %v1264_v4  ;;  %v2966_v26 = vadd.f32 %v2770_v37, %v934_v23 }
 0x1b4   : > { %v2297_v2 = vpop.eup %2296  ;;  %v1666_v29 = vsel %vm1656_vm6, %v1633_v20, %v2911_v42  ;;  %v1266_v31 = vadd.f32 %v2295_v13, %v1265_v25  ;;  %v2075_v33 = vmul.f32 -1.442695, %v2966_v26  ;;  %v1288_v42 = vand.u32 2147483648, %v1091_v14 }
 0x1b5   : > { %v2299_v35 = vpop.eup %2298  ;;  %1698 = vst [vmem:[%s2823_s8 + $0x48] sm:$0xff] %v1666_v29  ;;  %v1092_v30 = vadd.f32 1.0, %v2297_v2 }
 0x1b6   : > { %v1270_v36 = vsel %vm1269_vm15, %v2295_v13, %v1266_v31  ;;  %v1278_v48 = vmul.f32 %v2299_v35, %v1091_v14  ;;  %2300 = vpow2.f32 %v2075_v33  ;;  %vm1283_vm1 = vweird.f32 %v2299_v35 }
 0x1b7   : > { %v1275_v39 = vsel %vm1272_vm0, %v1274_v53, %v1270_v36  ;;  %2302 = vrcp.f32 %v1092_v30  ;;  %vm1284_vm3 = vmor %vm1282_vm2, %vm1283_vm1  ;;  %v1289_v32 = vor.u32 1.1754944e-38, %v1288_v42  ;;  %v1301_v61 = vand.u32 2147483647, %v1092_v30 }
 0x1b8   : > { %v1602_v40 = vmax.f32 %v1275_v39, 0.0001  ;;  %v1279_v41 = vsub.f32 1.0, %v1278_v48  ;;  %vm1297_vm7 = vweird.f32 %v1092_v30 }
 0x1b9   : > { %v937_v44 = vpop.f32.mrf.mxu2  ;;  %vm1302_vm9 = vcmp.eq.f32.partialorder %v1301_v61, 8.507059e+37 }
 0x1ba   : > { %v1634_v45 = vmin.f32 %v1602_v40, 0.9999  ;;  %v1280_v46 = vmul.f32 %v2299_v35, %v1279_v41  ;;  %v2974_v47 = vadd.f32 %v2770_v37, %v937_v44 }
 0x1bc   : > { %v2301_v12 = vpop.eup %2300  ;;  %v1667_v52 = vsel %vm1656_vm6, %v1634_v45, %v2926_v24  ;;  %v1281_v0 = vadd.f32 %v2299_v35, %v1280_v46  ;;  %v2076_v54 = vmul.f32 -1.442695, %v2974_v47  ;;  %v1303_v24 = vand.u32 2147483648, %v1092_v30 }
 0x1bd   : > { %v2303_v34 = vpop.eup %2302  ;;  %1699 = vst [vmem:[%s2823_s8 + $0x50] sm:$0xff] %v1667_v52  ;;  %v1093_v55 = vadd.f32 1.0, %v2301_v12 }
 0x1be   : > { %v1285_v56 = vsel %vm1284_vm3, %v2299_v35, %v1281_v0  ;;  %v1293_v58 = vmul.f32 %v2303_v34, %v1092_v30  ;;  %2304 = vpow2.f32 %v2076_v54  ;;  %vm1298_vm5 = vweird.f32 %v2303_v34 }
 0x1bf   : > { %v1290_v49 = vsel %vm1287_vm4, %v1289_v32, %v1285_v56  ;;  %2306 = vrcp.f32 %v1093_v55  ;;  %vm1299_vm8 = vmor %vm1297_vm7, %vm1298_vm5  ;;  %v1304_v7 = vor.u32 1.1754944e-38, %v1303_v24  ;;  %v1316_v27 = vand.u32 2147483647, %v1093_v55 }
 0x1c0   : > { %v1603_v59 = vmax.f32 %v1290_v49, 0.0001  ;;  %v1294_v60 = vsub.f32 1.0, %v1293_v58  ;;  %vm1312_vm11 = vweird.f32 %v1093_v55 }
 0x1c1   : > { %v939_v8 = vpop.f32.mrf.mxu2  ;;  %vm1317_vm13 = vcmp.eq.f32.partialorder %v1316_v27, 8.507059e+37 }
 0x1c2   : > { %v1635_v57 = vmin.f32 %v1603_v59, 0.9999  ;;  %v1295_v63 = vmul.f32 %v2303_v34, %v1294_v60  ;;  %v2982_v38 = vadd.f32 %v2770_v37, %v939_v8 }
 0x1c4   : > { %v2305_v62 = vpop.eup %2304  ;;  %v1668_v1 = vsel %vm1656_vm6, %v1635_v57, %v2945_v51  ;;  %v1296_v50 = vadd.f32 %v2303_v34, %v1295_v63  ;;  %v2077_v3 = vmul.f32 -1.442695, %v2982_v38  ;;  %v1318_v51 = vand.u32 2147483648, %v1093_v55 }
 0x1c5   : > { %v2307_v5 = vpop.eup %2306  ;;  %1700 = vst [vmem:[%s2823_s8 + $0x58] sm:$0xff] %v1668_v1  ;;  %v1094_v9 = vadd.f32 1.0, %v2305_v62 }
 0x1c6   : > { %v1300_v10 = vsel %vm1299_vm8, %v2303_v34, %v1296_v50  ;;  %v1308_v11 = vmul.f32 %v2307_v5, %v1093_v55  ;;  %2308 = vpow2.f32 %v2077_v3  ;;  %vm1313_vm10 = vweird.f32 %v2307_v5 }
 0x1c7   : > { %v1305_v13 = vsel %vm1302_vm9, %v1304_v7, %v1300_v10  ;;  %2310 = vrcp.f32 %v1094_v9  ;;  %vm1314_vm12 = vmor %vm1312_vm11, %vm1313_vm10  ;;  %v1319_v25 = vor.u32 1.1754944e-38, %v1318_v51  ;;  %v1331_v30 = vand.u32 2147483647, %v1094_v9 }
 0x1c8   : > { %v1604_v21 = vmax.f32 %v1305_v13, 0.0001  ;;  %v1309_v14 = vsub.f32 1.0, %v1308_v11  ;;  %vm1327_vm15 = vweird.f32 %v1094_v9 }
 0x1c9   : > { %v942_v15 = vpop.f32.mrf.mxu2  ;;  %vm1332_vm1 = vcmp.eq.f32.partialorder %v1331_v30, 8.507059e+37 }
 0x1ca   : > { %v1636_v17 = vmin.f32 %v1604_v21, 0.9999  ;;  %v1310_v16 = vmul.f32 %v2307_v5, %v1309_v14  ;;  %v2990_v18 = vadd.f32 %v2770_v37, %v942_v15 }
 0x1cc   : > { %v2309_v4 = vpop.eup %2308  ;;  %v1669_v19 = vsel %vm1656_vm6, %v1636_v17, %v2957_v6  ;;  %v1311_v22 = vadd.f32 %v2307_v5, %v1310_v16  ;;  %v2078_v23 = vmul.f32 -1.442695, %v2990_v18  ;;  %v1333_v6 = vand.u32 2147483648, %v1094_v9 }
 0x1cd   : > { %v2311_v20 = vpop.eup %2310  ;;  %1701 = vst [vmem:[%s2823_s8 + $0x60] sm:$0xff] %v1669_v19  ;;  %v1095_v2 = vadd.f32 1.0, %v2309_v4 }
 0x1ce   : > { %v1315_v29 = vsel %vm1314_vm12, %v2307_v5, %v1311_v22  ;;  %v1323_v31 = vmul.f32 %v2311_v20, %v1094_v9  ;;  %2312 = vpow2.f32 %v2078_v23  ;;  %vm1328_vm14 = vweird.f32 %v2311_v20 }
 0x1cf   : > { %v1320_v33 = vsel %vm1317_vm13, %v1319_v25, %v1315_v29  ;;  %2314 = vrcp.f32 %v1095_v2  ;;  %vm1329_vm0 = vmor %vm1327_vm15, %vm1328_vm14  ;;  %v1334_v46 = vor.u32 1.1754944e-38, %v1333_v6  ;;  %v1346_v55 = vand.u32 2147483647, %v1095_v2 }
 0x1d0   : > { %v1605_v35 = vmax.f32 %v1320_v33, 0.0001  ;;  %v1324_v53 = vsub.f32 1.0, %v1323_v31  ;;  %vm1342_vm3 = vweird.f32 %v1095_v2  ;;  %v3024_v33 = vld [vmem:[%s3195_s4] ss:$0 sm:$0xff] }
 0x1d1   : > { %v944_v36 = vpop.f32.mrf.mxu2  ;;  %vm1347_vm5 = vcmp.eq.f32.partialorder %v1346_v55, 8.507059e+37 }
 0x1d2   : > { %v1637_v48 = vmin.f32 %v1605_v35, 0.9999  ;;  %v1325_v39 = vmul.f32 %v2311_v20, %v1324_v53  ;;  %v2998_v40 = vadd.f32 %v2770_v37, %v944_v36 }
 0x1d4   : > { %v2313_v41 = vpop.eup %2312  ;;  %v1670_v43 = vsel %vm1656_vm6, %v1637_v48, %v2966_v26  ;;  %v1326_v42 = vadd.f32 %v2311_v20, %v1325_v39  ;;  %v2079_v44 = vmul.f32 -1.442695, %v2998_v40  ;;  %v1348_v26 = vand.u32 2147483648, %v1095_v2 }
 0x1d5   : > { %v2315_v45 = vpop.eup %2314  ;;  %1702 = vst [vmem:[%s2823_s8 + $0x68] sm:$0xff] %v1670_v43  ;;  %v1096_v12 = vadd.f32 1.0, %v2313_v41 }
 0x1d6   : > { %v1330_v52 = vsel %vm1329_vm0, %v2311_v20, %v1326_v42  ;;  %v1338_v0 = vmul.f32 %v2315_v45, %v1095_v2  ;;  %2316 = vpow2.f32 %v2079_v44  ;;  %vm1343_vm2 = vweird.f32 %v2315_v45 }
 0x1d7   : > { %v1335_v54 = vsel %vm1332_vm1, %v1334_v46, %v1330_v52  ;;  %2318 = vrcp.f32 %v1096_v12  ;;  %vm1344_vm4 = vmor %vm1342_vm3, %vm1343_vm2  ;;  %v1349_v63 = vor.u32 1.1754944e-38, %v1348_v26  ;;  %v1361_v9 = vand.u32 2147483647, %v1096_v12 }
 0x1d8   : > { %v1606_v34 = vmax.f32 %v1335_v54, 0.0001  ;;  %v1339_v32 = vsub.f32 1.0, %v1338_v0  ;;  %vm1357_vm8 = vweird.f32 %v1096_v12 }
 0x1d9   : > { %v947_v56 = vpop.f32.mrf.mxu2  ;;  %vm1362_vm10 = vcmp.eq.f32.partialorder %v1361_v9, 8.507059e+37 }
 0x1da   : > { %v1638_v58 = vmin.f32 %v1606_v34, 0.9999  ;;  %v1340_v49 = vmul.f32 %v2315_v45, %v1339_v32  ;;  %v3006_v59 = vadd.f32 %v2770_v37, %v947_v56 }
 0x1dc   : > { %v2317_v60 = vpop.eup %2316  ;;  %v1671_v61 = vsel %vm1656_vm6, %v1638_v58, %v2974_v47  ;;  %v1341_v24 = vadd.f32 %v2315_v45, %v1340_v49  ;;  %v2080_v8 = vmul.f32 -1.442695, %v3006_v59  ;;  %v1363_v47 = vand.u32 2147483648, %v1096_v12 }
 0x1dd   : > { %v2319_v57 = vpop.eup %2318  ;;  %1703 = vst [vmem:[%s2823_s8 + $0x70] sm:$0xff] %v1671_v61  ;;  %v1097_v62 = vadd.f32 1.0, %v2317_v60 }
 0x1de   : > { %v1345_v1 = vsel %vm1344_vm4, %v2315_v45, %v1341_v24  ;;  %v1353_v50 = vmul.f32 %v2319_v57, %v1096_v12  ;;  %2320 = vpow2.f32 %v2080_v8  ;;  %vm1358_vm7 = vweird.f32 %v2319_v57 }
 0x1df   : > { %v1350_v3 = vsel %vm1347_vm5, %v1349_v63, %v1345_v1  ;;  %2322 = vrcp.f32 %v1097_v62  ;;  %vm1359_vm9 = vmor %vm1357_vm8, %vm1358_vm7  ;;  %v1364_v16 = vor.u32 1.1754944e-38, %v1363_v47  ;;  %v1376_v25 = vand.u32 2147483647, %v1097_v62 }
 0x1e0   : > { %v1607_v5 = vmax.f32 %v1350_v3, 0.0001  ;;  %v1354_v7 = vsub.f32 1.0, %v1353_v50  ;;  %vm1372_vm12 = vweird.f32 %v1097_v62 }
 0x1e1   : > { %v949_v10 = vpop.f32.mrf.mxu2  ;;  %vm1377_vm14 = vcmp.eq.f32.partialorder %v1376_v25, 8.507059e+37 }
 0x1e2   : > { %v1639_v11 = vmin.f32 %v1607_v5, 0.9999  ;;  %v1355_v13 = vmul.f32 %v2319_v57, %v1354_v7  ;;  %v3014_v21 = vadd.f32 %v2770_v37, %v949_v10 }
 0x1e4   : > { %v2321_v14 = vpop.eup %2320  ;;  %v1672_v27 = vsel %vm1656_vm6, %v1639_v11, %v2982_v38  ;;  %v1356_v51 = vadd.f32 %v2319_v57, %v1355_v13  ;;  %v2081_v15 = vmul.f32 -1.442695, %v3014_v21  ;;  %v1378_v38 = vand.u32 2147483648, %v1097_v62 }
 0x1e5   : > { %v2323_v17 = vpop.eup %2322  ;;  %1704 = vst [vmem:[%s2823_s8 + $0x78] sm:$0xff] %v1672_v27  ;;  %v1098_v4 = vadd.f32 1.0, %v2321_v14 }
 0x1e6   : > { %v1360_v19 = vsel %vm1359_vm9, %v2319_v57, %v1356_v51  ;;  %v1368_v22 = vmul.f32 %v2323_v17, %v1097_v62  ;;  %2324 = vpow2.f32 %v2081_v15  ;;  %vm1373_vm11 = vweird.f32 %v2323_v17 }
 0x1e7   : > { %v1365_v37 = vsel %vm1362_vm10, %v1364_v16, %v1360_v19  ;;  %2326 = vrcp.f32 %v1098_v4  ;;  %vm1374_vm13 = vmor %vm1372_vm12, %vm1373_vm11  ;;  %v1379_v39 = vor.u32 1.1754944e-38, %v1378_v38  ;;  %v1391_v12 = vand.u32 2147483647, %v1098_v4 }
 0x1e8   : > { %v1608_v23 = vmax.f32 %v1365_v37, 0.0001  ;;  %v1369_v20 = vsub.f32 1.0, %v1368_v22  ;;  %vm1387_vm0 = vweird.f32 %v1098_v4 }
 0x1e9   : > { %v952_v2 = vpop.f32.mrf.mxu2  ;;  %vm1392_vm2 = vcmp.eq.f32.partialorder %v1391_v12, 8.507059e+37 }
 0x1ea   : > { %v1640_v29 = vmin.f32 %v1608_v23, 0.9999  ;;  %v1370_v31 = vmul.f32 %v2323_v17, %v1369_v20  ;;  %v3027_v35 = vadd.f32 %v3024_v33, %v952_v2 }
 0x1ec   : > { %v2325_v53 = vpop.eup %2324  ;;  %v1673_v30 = vsel %vm1656_vm6, %v1640_v29, %v2990_v18  ;;  %v1371_v6 = vadd.f32 %v2323_v17, %v1370_v31  ;;  %v2082_v36 = vmul.f32 -1.442695, %v3027_v35  ;;  %v1393_v18 = vand.u32 2147483648, %v1098_v4 }
 0x1ed   : > { %v2327_v48 = vpop.eup %2326  ;;  %1705 = vst [vmem:[%s2823_s8 + $0x80] sm:$0xff] %v1673_v30  ;;  %v1099_v41 = vadd.f32 1.0, %v2325_v53 }
 0x1ee   : > { %v1375_v43 = vsel %vm1374_vm13, %v2323_v17, %v1371_v6  ;;  %v1383_v42 = vmul.f32 %v2327_v48, %v1098_v4  ;;  %2328 = vpow2.f32 %v2082_v36  ;;  %vm1388_vm15 = vweird.f32 %v2327_v48 }
 0x1ef   : > { %v1380_v44 = vsel %vm1377_vm14, %v1379_v39, %v1375_v43  ;;  %2330 = vrcp.f32 %v1099_v41  ;;  %vm1389_vm1 = vmor %vm1387_vm0, %vm1388_vm15  ;;  %v1394_v49 = vor.u32 1.1754944e-38, %v1393_v18  ;;  %v1408_v62 = vand.u32 2147483648, %v1099_v41 }
 0x1f0   : > { %v1609_v45 = vmax.f32 %v1380_v44, 0.0001  ;;  %v1384_v46 = vsub.f32 1.0, %v1383_v42  ;;  %v1406_v50 = vand.u32 2147483647, %v1099_v41  ;;  %vm1402_vm4 = vweird.f32 %v1099_v41 }
 0x1f1   : > { %v954_v52 = vpop.f32.mrf.mxu2  ;;  %v1409_v11 = vor.u32 1.1754944e-38, %v1408_v62 }
 0x1f2   : > { %v1641_v0 = vmin.f32 %v1609_v45, 0.9999  ;;  %v1385_v54 = vmul.f32 %v2327_v48, %v1384_v46  ;;  %v3035_v34 = vadd.f32 %v3024_v33, %v954_v52  ;;  %vm1407_vm7 = vcmp.eq.f32.partialorder %v1406_v50, 8.507059e+37 }
 0x1f4   : > { %v2329_v32 = vpop.eup %2328  ;;  %v1674_v55 = vsel %vm1656_vm6, %v1641_v0, %v2998_v40  ;;  %v1386_v26 = vadd.f32 %v2327_v48, %v1385_v54  ;;  %v2083_v56 = vmul.f32 -1.442695, %v3035_v34 }
 0x1f5   : > { %v2331_v58 = vpop.eup %2330  ;;  %1706 = vst [vmem:[%s2823_s8 + $0x88] sm:$0xff] %v1674_v55  ;;  %v1100_v60 = vadd.f32 1.0, %v2329_v32 }
 0x1f6   : > { %v1390_v61 = vsel %vm1389_vm1, %v2327_v48, %v1386_v26  ;;  %v1398_v24 = vmul.f32 %v2331_v58, %v1099_v41  ;;  %2332 = vpow2.f32 %v2083_v56  ;;  %vm1403_vm3 = vweird.f32 %v2331_v58 }
 0x1f7   : > { %v1395_v8 = vsel %vm1392_vm2, %v1394_v49, %v1390_v61  ;;  %2334 = vrcp.f32 %v1100_v60  ;;  %vm1404_vm5 = vmor %vm1402_vm4, %vm1403_vm3  ;;  %v1423_v4 = vand.u32 2147483648, %v1100_v60  ;;  %v1421_v22 = vand.u32 2147483647, %v1100_v60 }
 0x1f8   : > { %v1610_v57 = vmax.f32 %v1395_v8, 0.0001  ;;  %v1399_v63 = vsub.f32 1.0, %v1398_v24  ;;  %vm1417_vm9 = vweird.f32 %v1100_v60 }
 0x1f9   : > { %v957_v3 = vpop.f32.mrf.mxu2  ;;  %v1424_v31 = vor.u32 1.1754944e-38, %v1423_v4  ;;  %vm1422_vm11 = vcmp.eq.f32.partialorder %v1421_v22, 8.507059e+37 }
 0x1fa   : > { %v1642_v40 = vmin.f32 %v1610_v57, 0.9999  ;;  %v1400_v1 = vmul.f32 %v2331_v58, %v1399_v63  ;;  %v3043_v5 = vadd.f32 %v3024_v33, %v957_v3 }
 0x1fc   : > { %v2333_v7 = vpop.eup %2332  ;;  %v1675_v9 = vsel %vm1656_vm6, %v1642_v40, %v3006_v59  ;;  %v1401_v47 = vadd.f32 %v2331_v58, %v1400_v1  ;;  %v2084_v14 = vmul.f32 -1.442695, %v3043_v5 }
 0x1fd   : > { %v2335_v10 = vpop.eup %2334  ;;  %1707 = vst [vmem:[%s2823_s8 + $0x90] sm:$0xff] %v1675_v9  ;;  %v1101_v13 = vadd.f32 1.0, %v2333_v7 }
 0x1fe   : > { %v1405_v27 = vsel %vm1404_vm5, %v2331_v58, %v1401_v47  ;;  %v1413_v51 = vmul.f32 %v2335_v10, %v1100_v60  ;;  %vm1418_vm8 = vweird.f32 %v2335_v10 }
 0x1ff   : > { %v1410_v15 = vsel %vm1407_vm7, %v1409_v11, %v1405_v27  ;;  %2336 = vrcp.f32 %v1101_v13  ;;  %vm1419_vm10 = vmor %vm1417_vm9, %vm1418_vm8  ;;  %v1438_v42 = vand.u32 2147483648, %v1101_v13  ;;  %v1436_v46 = vand.u32 2147483647, %v1101_v13 }
 0x200   : > { %v1611_v17 = vmax.f32 %v1410_v15, 0.0001  ;;  %v1414_v16 = vsub.f32 1.0, %v1413_v51  ;;  %2338 = vpow2.f32 %v2084_v14  ;;  %vm1432_vm13 = vweird.f32 %v1101_v13 }
 0x201   : > { %v959_v37 = vpop.f32.mrf.mxu2  ;;  %v1439_v32 = vor.u32 1.1754944e-38, %v1438_v42  ;;  %vm1437_vm15 = vcmp.eq.f32.partialorder %v1436_v46, 8.507059e+37 }
 0x202   : > { %v1643_v59 = vmin.f32 %v1611_v17, 0.9999  ;;  %v1415_v19 = vmul.f32 %v2335_v10, %v1414_v16  ;;  %v3051_v23 = vadd.f32 %v3024_v33, %v959_v37 }
 0x204   : > { %v962_v20 = vpop.f32.mrf.mxu3  ;;  %v1676_v25 = vsel %vm1656_vm6, %v1643_v59, %v3014_v21  ;;  %v1416_v38 = vadd.f32 %v2335_v10, %v1415_v19  ;;  %v2085_v53 = vmul.f32 -1.442695, %v3051_v23 }
 0x205   : > { %v3057_v2 = vadd.f32 %v3024_v33, %v962_v20  ;;  %v2337_v29 = vpop.eup %2336  ;;  %1708 = vst [vmem:[%s2823_s8 + $0x98] sm:$0xff] %v1676_v25 }
 0x206   : > { %v2339_v30 = vpop.eup %2338  ;;  %v1420_v6 = vsel %vm1419_vm10, %v2335_v10, %v1416_v38  ;;  %v1428_v36 = vmul.f32 %v2337_v29, %v1101_v13  ;;  %2340 = vpow2.f32 %v2085_v53  ;;  %vm1433_vm12 = vweird.f32 %v2337_v29 }
 0x207   : > { %v2086_v48 = vmul.f32 -1.442695, %v3057_v2  ;;  %v1425_v39 = vsel %vm1422_vm11, %v1424_v31, %v1420_v6  ;;  %v1102_v41 = vadd.f32 1.0, %v2339_v30  ;;  %vm1434_vm14 = vmor %vm1432_vm13, %vm1433_vm12 }
 0x208   : > { %v1612_v21 = vmax.f32 %v1425_v39, 0.0001  ;;  %v1429_v43 = vsub.f32 1.0, %v1428_v36 }
 0x209   : > { %2342 = vpow2.f32 %v2086_v48  ;;  %v1451_v63 = vand.u32 2147483647, %v1102_v41  ;;  %v1453_v62 = vand.u32 2147483648, %v1102_v41  ;;  %vm1447_vm1 = vweird.f32 %v1102_v41 }
 0x20a   : > { %2344 = vrcp.f32 %v1102_v41  ;;  %v1644_v44 = vmin.f32 %v1612_v21, 0.9999  ;;  %v1430_v45 = vmul.f32 %v2337_v29, %v1429_v43 }
 0x20b   : > { %v1454_v11 = vor.u32 1.1754944e-38, %v1453_v62  ;;  %vm1452_vm3 = vcmp.eq.f32.partialorder %v1451_v63, 8.507059e+37 }
 0x20c   : > { %v964_v12 = vpop.f32.mrf.mxu3  ;;  %v1677_v18 = vsel %vm1656_vm6, %v1644_v44, %v3027_v35  ;;  %v1431_v52 = vadd.f32 %v2337_v29, %v1430_v45  ;;  %v2341_v54 = vpop.eup %2340 }
 0x20d   : > { %v3066_v0 = vadd.f32 %v3024_v33, %v964_v12  ;;  %1709 = vst [vmem:[%s2823_s8 + $0xa0] sm:$0xff] %v1677_v18  ;;  %v1103_v56 = vadd.f32 1.0, %v2341_v54 }
 0x20e   : > { %v1435_v26 = vsel %vm1434_vm14, %v2337_v29, %v1431_v52 }
 0x20f   : > { %v2343_v55 = vpop.eup %2342  ;;  %v1440_v49 = vsel %vm1437_vm15, %v1439_v32, %v1435_v26  ;;  %v2087_v35 = vmul.f32 -1.442695, %v3066_v0  ;;  %2346 = vrcp.f32 %v1103_v56  ;;  %v1466_v17 = vand.u32 2147483647, %v1103_v56 }
 0x210   : > { %v2345_v58 = vpop.eup %2344  ;;  %v3069_v60 = vadd.f32 1.0, %v2343_v55  ;;  %v1613_v61 = vmax.f32 %v1440_v49, 0.0001  ;;  %v1468_v4 = vand.u32 2147483648, %v1103_v56  ;;  %vm1462_vm7 = vweird.f32 %v1103_v56 }
 0x211   : > { %v1443_v24 = vmul.f32 %v2345_v58, %v1102_v41  ;;  %vm1448_vm0 = vweird.f32 %v2345_v58  ;;  %vm1467_vm10 = vcmp.eq.f32.partialorder %v1466_v17, 8.507059e+37 }
 0x212   : > { %2348 = vrcp.f32 %v3069_v60  ;;  %v1645_v8 = vmin.f32 %v1613_v61, 0.9999  ;;  %vm1449_vm2 = vmor %vm1447_vm1, %vm1448_vm0  ;;  %v1481_v37 = vand.u32 2147483647, %v3069_v60  ;;  %v1483_v20 = vand.u32 2147483648, %v3069_v60 }
 0x213   : > { %v1444_v57 = vsub.f32 1.0, %v1443_v24  ;;  %2350 = vpow2.f32 %v2087_v35  ;;  %v1469_v36 = vor.u32 1.1754944e-38, %v1468_v4  ;;  %vm1477_vm9 = vweird.f32 %v3069_v60 }
 0x214   : > { %v967_v40 = vpop.f32.mrf.mxu3  ;;  %v1678_v1 = vsel %vm1656_vm6, %v1645_v8, %v3035_v34  ;;  %v1484_v41 = vor.u32 1.1754944e-38, %v1483_v20  ;;  %vm1482_vm12 = vcmp.eq.f32.partialorder %v1481_v37, 8.507059e+37 }
 0x215   : > { %v1445_v50 = vmul.f32 %v2345_v58, %v1444_v57  ;;  %v3077_v3 = vadd.f32 %v3024_v33, %v967_v40  ;;  %1710 = vst [vmem:[%s2823_s8 + $0xa8] sm:$0xff] %v1678_v1  ;;  %v2347_v7 = vpop.eup %2346 }
 0x216   : > { %v1458_v13 = vmul.f32 %v2347_v7, %v1103_v56  ;;  %vm1463_vm4 = vweird.f32 %v2347_v7 }
 0x217   : > { %v1446_v9 = vadd.f32 %v2345_v58, %v1445_v50  ;;  %v2088_v47 = vmul.f32 -1.442695, %v3077_v3  ;;  %vm1464_vm8 = vmor %vm1462_vm7, %vm1463_vm4 }
 0x218   : > { %v2349_v10 = vpop.eup %2348  ;;  %v1459_v15 = vsub.f32 1.0, %v1458_v13 }
 0x219   : > { %v1450_v14 = vsel %vm1449_vm2, %v2345_v58, %v1446_v9  ;;  %v1473_v27 = vmul.f32 %v2349_v10, %v3069_v60  ;;  %2352 = vpow2.f32 %v2088_v47  ;;  %v2351_v34 = vpop.eup %2350  ;;  %vm1478_vm5 = vweird.f32 %v2349_v10 }
 0x21a   : > { %v1455_v51 = vsel %vm1452_vm3, %v1454_v11, %v1450_v14  ;;  %v1105_v19 = vadd.f32 1.0, %v2351_v34  ;;  %v1460_v22 = vmul.f32 %v2347_v7, %v1459_v15  ;;  %vm1479_vm11 = vmor %vm1477_vm9, %vm1478_vm5 }
 0x21b   : > { %v1614_v16 = vmax.f32 %v1455_v51, 0.0001  ;;  %v1474_v59 = vsub.f32 1.0, %v1473_v27 }
 0x21c   : > { %v969_v25 = vpop.f32.mrf.mxu3  ;;  %2354 = vrcp.f32 %v1105_v19  ;;  %v1461_v31 = vadd.f32 %v2347_v7, %v1460_v22  ;;  %v1496_v49 = vand.u32 2147483647, %v1105_v19  ;;  %v1498_v60 = vand.u32 2147483648, %v1105_v19 }
 0x21d   : > { %v1646_v38 = vmin.f32 %v1614_v16, 0.9999  ;;  %v1475_v29 = vmul.f32 %v2349_v10, %v1474_v59  ;;  %v3085_v53 = vadd.f32 %v3024_v33, %v969_v25  ;;  %vm1492_vm14 = vweird.f32 %v1105_v19 }
 0x21e   : > { %v1465_v39 = vsel %vm1464_vm8, %v2347_v7, %v1461_v31  ;;  %vm1497_vm0 = vcmp.eq.f32.partialorder %v1496_v49, 8.507059e+37  ;;  %v1499_v62 = vor.u32 1.1754944e-38, %v1498_v60 }
 0x21f   : > { %v2353_v30 = vpop.eup %2352  ;;  %v1679_v6 = vsel %vm1656_vm6, %v1646_v38, %v3043_v5  ;;  %v1476_v48 = vadd.f32 %v2349_v10, %v1475_v29  ;;  %v1470_v43 = vsel %vm1467_vm10, %v1469_v36, %v1465_v39  ;;  %v2089_v44 = vmul.f32 -1.442695, %v3085_v53 }
 0x220   : > { %1711 = vst [vmem:[%s2823_s8 + $0xb0] sm:$0xff] %v1679_v6  ;;  %v1106_v21 = vadd.f32 1.0, %v2353_v30  ;;  %v1615_v45 = vmax.f32 %v1470_v43, 0.0001 }
 0x221   : > { %v1480_v42 = vsel %vm1479_vm11, %v2349_v10, %v1476_v48 }
 0x222   : > { %v1485_v46 = vsel %vm1482_vm12, %v1484_v41, %v1480_v42  ;;  %2356 = vrcp.f32 %v1106_v21  ;;  %v2355_v5 = vpop.eup %2354  ;;  %v1647_v18 = vmin.f32 %v1615_v45, 0.9999  ;;  %v1513_v50 = vand.u32 2147483648, %v1106_v21 }
 0x223   : > { %v1616_v12 = vmax.f32 %v1485_v46, 0.0001  ;;  %2358 = vpow2.f32 %v2089_v44  ;;  %v1488_v52 = vmul.f32 %v2355_v5, %v1105_v19  ;;  %vm1493_vm13 = vweird.f32 %v2355_v5 }
 0x224   : > { %v972_v54 = vpop.f32.mrf.mxu3  ;;  %v1680_v26 = vsel %vm1656_vm6, %v1647_v18, %v3051_v23  ;;  %vm1494_vm15 = vmor %vm1492_vm14, %vm1493_vm13  ;;  %vm1507_vm2 = vweird.f32 %v1106_v21  ;;  %v1514_v51 = vor.u32 1.1754944e-38, %v1513_v50 }
 0x225   : > { %v1648_v32 = vmin.f32 %v1616_v12, 0.9999  ;;  %v3094_v55 = vadd.f32 %v3024_v33, %v972_v54  ;;  %v1489_v56 = vsub.f32 1.0, %v1488_v52  ;;  %1712 = vst [vmem:[%s2823_s8 + $0xb8] sm:$0xff] %v1680_v26 }
 0x227   : > { %v1681_v58 = vsel %vm1656_vm6, %v1648_v32, %v3057_v2  ;;  %v2090_v35 = vmul.f32 -1.442695, %v3094_v55  ;;  %v1490_v24 = vmul.f32 %v2355_v5, %v1489_v56  ;;  %v1511_v2 = vand.u32 2147483647, %v1106_v21 }
 0x228   : > { %v2357_v61 = vpop.eup %2356  ;;  %1713 = vst [vmem:[%s2823_s8 + $0xc0] sm:$0xff] %v1681_v58 }
 0x229   : > { %v2359_v8 = vpop.eup %2358  ;;  %v1503_v57 = vmul.f32 %v2357_v61, %v1106_v21  ;;  %2360 = vpow2.f32 %v2090_v35  ;;  %v1491_v63 = vadd.f32 %v2355_v5, %v1490_v24  ;;  %vm1508_vm1 = vweird.f32 %v2357_v61 }
 0x22a   : > { %v1107_v23 = vadd.f32 1.0, %v2359_v8  ;;  %vm1509_vm3 = vmor %vm1507_vm2, %vm1508_vm1  ;;  %vm1512_vm4 = vcmp.eq.f32.partialorder %v1511_v2, 8.507059e+37 }
 0x22b   : > { %v1504_v40 = vsub.f32 1.0, %v1503_v57  ;;  %v1495_v1 = vsel %vm1494_vm15, %v2355_v5, %v1491_v63 }
 0x22c   : > { %2362 = vrcp.f32 %v1107_v23  ;;  %v974_v7 = vpop.f32.mrf.mxu3  ;;  %v1500_v9 = vsel %vm1497_vm0, %v1499_v62, %v1495_v1  ;;  %v1526_v29 = vand.u32 2147483647, %v1107_v23  ;;  %v1528_v31 = vand.u32 2147483648, %v1107_v23 }
 0x22d   : > { %v1505_v47 = vmul.f32 %v2357_v61, %v1504_v40  ;;  %v3106_v10 = vadd.f32 %v3024_v33, %v974_v7  ;;  %v1617_v11 = vmax.f32 %v1500_v9, 0.0001  ;;  %vm1522_vm7 = vweird.f32 %v1107_v23 }
 0x22e   : > { %v1529_v43 = vor.u32 1.1754944e-38, %v1528_v31  ;;  %vm1527_vm9 = vcmp.eq.f32.partialorder %v1526_v29, 8.507059e+37 }
 0x22f   : > { %v2361_v13 = vpop.eup %2360  ;;  %v1506_v14 = vadd.f32 %v2357_v61, %v1505_v47  ;;  %v2091_v27 = vmul.f32 -1.442695, %v3106_v10  ;;  %v1649_v34 = vmin.f32 %v1617_v11, 0.9999 }
 0x230   : > { %v1108_v15 = vadd.f32 1.0, %v2361_v13 }
 0x231   : > { %v1510_v17 = vsel %vm1509_vm3, %v2357_v61, %v1506_v14  ;;  %2364 = vpow2.f32 %v2091_v27  ;;  %v1682_v4 = vsel %vm1656_vm6, %v1649_v34, %v3066_v0 }
 0x232   : > { %v2363_v16 = vpop.eup %2362  ;;  %v1515_v59 = vsel %vm1512_vm4, %v1514_v51, %v1510_v17  ;;  %2366 = vrcp.f32 %v1108_v15  ;;  %1714 = vst [vmem:[%s2823_s8 + $0xc8] sm:$0xff] %v1682_v4  ;;  %v1541_v46 = vand.u32 2147483647, %v1108_v15  ;;  %vm1537_vm11 = vweird.f32 %v1108_v15 }
 0x233   : > { %v1618_v19 = vmax.f32 %v1515_v59, 0.0001  ;;  %v1518_v22 = vmul.f32 %v2363_v16, %v1107_v23  ;;  %vm1523_vm5 = vweird.f32 %v2363_v16 }
 0x234   : > { %v977_v37 = vpop.f32.mrf.mxu3  ;;  %vm1524_vm8 = vmor %vm1522_vm7, %vm1523_vm5  ;;  %vm1542_vm13 = vcmp.eq.f32.partialorder %v1541_v46, 8.507059e+37 }
 0x235   : > { %v1650_v20 = vmin.f32 %v1618_v19, 0.9999  ;;  %v1519_v25 = vsub.f32 1.0, %v1518_v22  ;;  %v3114_v38 = vadd.f32 %v3024_v33, %v977_v37 }
 0x237   : > { %v2365_v30 = vpop.eup %2364  ;;  %v1683_v6 = vsel %vm1656_vm6, %v1650_v20, %v3077_v3  ;;  %v1520_v0 = vmul.f32 %v2363_v16, %v1519_v25  ;;  %v2092_v36 = vmul.f32 -1.442695, %v3114_v38  ;;  %v1543_v3 = vand.u32 2147483648, %v1108_v15 }
 0x238   : > { %v2367_v48 = vpop.eup %2366  ;;  %1715 = vst [vmem:[%s2823_s8 + $0xd0] sm:$0xff] %v1683_v6  ;;  %v1109_v39 = vadd.f32 1.0, %v2365_v30 }
 0x239   : > { %v1521_v41 = vadd.f32 %v2363_v16, %v1520_v0  ;;  %v1533_v21 = vmul.f32 %v2367_v48, %v1108_v15  ;;  %2368 = vpow2.f32 %v2092_v36  ;;  %vm1538_vm10 = vweird.f32 %v2367_v48 }
 0x23a   : > { %2370 = vrcp.f32 %v1109_v39  ;;  %vm1539_vm12 = vmor %vm1537_vm11, %vm1538_vm10  ;;  %v1544_v49 = vor.u32 1.1754944e-38, %v1543_v3  ;;  %v1558_v63 = vand.u32 2147483648, %v1109_v39  ;;  %v1556_v40 = vand.u32 2147483647, %v1109_v39 }
 0x23b   : > { %v1525_v42 = vsel %vm1524_vm8, %v2363_v16, %v1521_v41  ;;  %v1534_v44 = vsub.f32 1.0, %v1533_v21  ;;  %vm1552_vm15 = vweird.f32 %v1109_v39 }
 0x23c   : > { %v1530_v45 = vsel %vm1527_vm9, %v1529_v43, %v1525_v42  ;;  %v979_v5 = vpop.f32.mrf.mxu3  ;;  %v1559_v50 = vor.u32 1.1754944e-38, %v1558_v63  ;;  %vm1557_vm1 = vcmp.eq.f32.partialorder %v1556_v40, 8.507059e+37 }
 0x23d   : > { %v1619_v12 = vmax.f32 %v1530_v45, 0.0001  ;;  %v1535_v18 = vmul.f32 %v2367_v48, %v1534_v44  ;;  %v3122_v52 = vadd.f32 %v3024_v33, %v979_v5 }
 0x23f   : > { %v2369_v54 = vpop.eup %2368  ;;  %v1651_v32 = vmin.f32 %v1619_v12, 0.9999  ;;  %v1536_v26 = vadd.f32 %v2367_v48, %v1535_v18  ;;  %v2093_v56 = vmul.f32 -1.442695, %v3122_v52 }
 0x240   : > { %v2371_v58 = vpop.eup %2370  ;;  %v1110_v60 = vadd.f32 1.0, %v2369_v54 }
 0x241   : > { %v1684_v35 = vsel %vm1656_vm6, %v1651_v32, %v3085_v53  ;;  %v1540_v61 = vsel %vm1539_vm12, %v2367_v48, %v1536_v26  ;;  %v1548_v24 = vmul.f32 %v2371_v58, %v1109_v39  ;;  %vm1553_vm14 = vweird.f32 %v2371_v58 }
 0x242   : > { %1716 = vst [vmem:[%s2823_s8 + $0xd8] sm:$0xff] %v1684_v35  ;;  %v1545_v33 = vsel %vm1542_vm13, %v1544_v49, %v1540_v61  ;;  %2372 = vrcp.f32 %v1110_v60  ;;  %vm1554_vm0 = vmor %vm1552_vm15, %vm1553_vm14  ;;  %v1573_v34 = vand.u32 2147483648, %v1110_v60  ;;  %v1571_v15 = vand.u32 2147483647, %v1110_v60 }
 0x243   : > { %v1620_v8 = vmax.f32 %v1545_v33, 0.0001  ;;  %v1549_v57 = vsub.f32 1.0, %v1548_v24  ;;  %2374 = vpow2.f32 %v2093_v56  ;;  %vm1567_vm3 = vweird.f32 %v1110_v60 }
 0x244   : > { %v1574_v4 = vor.u32 1.1754944e-38, %v1573_v34  ;;  %vm1572_vm5 = vcmp.eq.f32.partialorder %v1571_v15, 8.507059e+37 }
 0x245   : > { %v1652_v23 = vmin.f32 %v1620_v8, 0.9999  ;;  %v1550_v62 = vmul.f32 %v2371_v58, %v1549_v57 }
 0x247   : > { %v1685_v1 = vsel %vm1656_vm6, %v1652_v23, %v3094_v55  ;;  %v1551_v53 = vadd.f32 %v2371_v58, %v1550_v62 }
 0x248   : > { %v2373_v2 = vpop.eup %2372  ;;  %1717 = vst [vmem:[%s2823_s8 + $0xe0] sm:$0xff] %v1685_v1 }
 0x249   : > { %v2375_v7 = vpop.eup %2374  ;;  %v1555_v9 = vsel %vm1554_vm0, %v2371_v58, %v1551_v53  ;;  %v1563_v47 = vmul.f32 %v2373_v2, %v1110_v60  ;;  %vm1568_vm2 = vweird.f32 %v2373_v2 }
 0x24a   : > { %v1560_v11 = vsel %vm1557_vm1, %v1559_v50, %v1555_v9  ;;  %v1111_v13 = vadd.f32 1.0, %v2375_v7  ;;  %vm1569_vm4 = vmor %vm1567_vm3, %vm1568_vm2 }
 0x24b   : > { %v1621_v14 = vmax.f32 %v1560_v11, 0.0001  ;;  %v1564_v27 = vsub.f32 1.0, %v1563_v47 }
 0x24c   : > { %2376 = vrcp.f32 %v1111_v13  ;;  %v1588_v31 = vand.u32 2147483648, %v1111_v13  ;;  %v1586_v6 = vand.u32 2147483647, %v1111_v13  ;;  %vm1582_vm8 = vweird.f32 %v1111_v13 }
 0x24d   : > { %v1653_v51 = vmin.f32 %v1621_v14, 0.9999  ;;  %v1565_v55 = vmul.f32 %v2373_v2, %v1564_v27 }
 0x24e   : > { %v1589_v36 = vor.u32 1.1754944e-38, %v1588_v31  ;;  %vm1587_vm10 = vcmp.eq.f32.partialorder %v1586_v6, 8.507059e+37 }
 0x24f   : > { %v1686_v17 = vsel %vm1656_vm6, %v1653_v51, %v3106_v10  ;;  %v1566_v16 = vadd.f32 %v2373_v2, %v1565_v55 }
 0x250   : > { %1718 = vst [vmem:[%s2823_s8 + $0xe8] sm:$0xff] %v1686_v17 }
 0x251   : > { %v1570_v59 = vsel %vm1569_vm4, %v2373_v2, %v1566_v16 }
 0x252   : > { %v2377_v19 = vpop.eup %2376  ;;  %v1575_v22 = vsel %vm1572_vm5, %v1574_v4, %v1570_v59 }
 0x253   : > { %v1622_v37 = vmax.f32 %v1575_v22, 0.0001  ;;  %v1578_v20 = vmul.f32 %v2377_v19, %v1111_v13  ;;  %vm1583_vm7 = vweird.f32 %v2377_v19 }
 0x254   : > { %vm1584_vm9 = vmor %vm1582_vm8, %vm1583_vm7 }
 0x255   : > { %v1654_v25 = vmin.f32 %v1622_v37, 0.9999  ;;  %v1579_v29 = vsub.f32 1.0, %v1578_v20 }
 0x257   : > { %v1687_v10 = vsel %vm1656_vm6, %v1654_v25, %v3114_v38  ;;  %v1580_v30 = vmul.f32 %v2377_v19, %v1579_v29 }
 0x258   : > { %1719 = vst [vmem:[%s2823_s8 + $0xf0] sm:$0xff] %v1687_v10 }
 0x259   : > { %v1581_v0 = vadd.f32 %v2377_v19, %v1580_v30 }
 0x25b   : > { %v1585_v48 = vsel %vm1584_vm9, %v2377_v19, %v1581_v0 }
 0x25c   : > { %v1590_v39 = vsel %vm1587_vm10, %v1589_v36, %v1585_v48 }
 0x25d   : > { %v1623_v38 = vmax.f32 %v1590_v39, 0.0001 }
 0x25f   : > { %v1655_v41 = vmin.f32 %v1623_v38, 0.9999 }
 0x261   : > { %v1688_v21 = vsel %vm1656_vm6, %v1655_v41, %v3122_v52 }
 0x262   : > { %1720 = vst [vmem:[%s2823_s8 + $0xf8] sm:$0xff] %v1688_v21 }
 0x263   : > { %2406 = shalt.err (!%p2403_p7)
}
 0x264   : > { %s2475_s30 = smov 128   ;;  %s2476_s8 = smov 8  }
 0x265   : > { %2175 = dma.vmem_to_hbm [thread:$0]  (%p2558_p3), %s1737_s15, 4096, %s1739_s17, %s1722_s26, %s2475_s30, %s2475_s30, %s2476_s8  }
 0x266 PF: > { %p2181_p9 = scmp.ge.s32.totalorder %s2473_s25, 2  ;;  %s1753_s22 = sand.u32 1, %s2445_s18  }
 0x267   : > { %s1754_s10 = scalar_lea.sflag [#allocation3], %s1753_s22 }
 0x268   : > { %p2178_p10 = pnand %p2181_p9, %p2567_p8 }
 0x26a   : > { %p2179_p11 = pneg %p2178_p10 }
 0x26c   : > { %2440 = dma.done.wait (%p2179_p11), %s1754_s10, 4096  }
 0x26d   : > { %2442 = vsyncadd (%p2179_p11), %s1754_s10, 4294963200  ;;  %s18_s25 = sadd.s32 1, %s2473_s25   ;;  %s3201_s6 = sld [smem:[#allocation5_spill]] }
 0x26e   : > { %p15_p12 = scmp.ge.s32.totalorder %s18_s25, 6   ;;  %s3202_s18 = smov %s2449_s19 }
 0x26f   : > { %s3203_s19 = smov %s2453_s20  ;;  %s3204_s20 = smov %s2576_s11 }
 0x270   : > { %s3205_s21 = smov %s2465_s23  ;;  %s3206_s22 = smov %s2469_s24 }
 0x271   : > { %s3207_s23 = smov %s3210_s28  ;;  %17 = sbr.rel (!%p15_p12) target bundleno = 5 (0x5), region = 75 }
 0x273   : > { %s3208_s24 = smov %s3201_s6 }
 0x276   :  { %1760 = vsyncpa [#allocation3], 1 }
 0x277   :  { %1762 = vsyncpa [#allocation3 + $0x1], 1 }

</bundles_post_ra>
